<compile_context>
chip_gen: v6e
topology: v6e:2x2x1
jax: 0.10.0
libtpu: 0.0.40
codegen_flags: <defaults>
</compile_context>

<pallas_src>
import jax
import jax.numpy as jnp
from jax.experimental import pallas as pl
from jax.experimental.pallas import tpu as pltpu


_LANE = 128
# Scoped VMEM limit: above the 16/32 MiB defaults, below v7x's 64 MiB physical.
_VMEM_LIMIT_BYTES = 48 * 1024 * 1024


def _round_up(x, m):
    return ((x + m - 1) // m) * m


def _largest_divisor_leq(n, cap):
    cap = max(1, min(cap, n))
    for d in range(cap, 0, -1):
        if n % d == 0:
            return d
    return 1


# ----------------------------------------------------------------------------
# Parallel matmul + bias kernel (used for both hoisted projections).
# ----------------------------------------------------------------------------
def _matmul_bias_kernel(x_ref, w_ref, b_ref, o_ref):
    # Operands arrive in bf16 (MXU-native); accumulate in f32; add f32 bias.
    o_ref[...] = (jnp.dot(x_ref[...], w_ref[...],
                          preferred_element_type=jnp.float32)
                  + b_ref[...]).astype(o_ref.dtype)


def matmul_bias(x, w, b, *, tm=512, tn=1024, out_dtype=jnp.float32):
    """(M, K) @ (K, N) + (1, N) -> (M, N).

    Grid order is (N-tiles OUTER, M-tiles INNER) so the weight block index
    depends only on the outer axis: each (K, tn) weight slab is DMA'd from HBM
    exactly once.  This matters most for the vocab-sized output Linear.
    """
    M, K = x.shape
    _, N = w.shape
    tm = min(tm, M)
    tn = min(tn, N)
    grid = (pl.cdiv(N, tn), pl.cdiv(M, tm))
    return pl.pallas_call(
        _matmul_bias_kernel,
        out_shape=jax.ShapeDtypeStruct((M, N), out_dtype),
        grid_spec=pltpu.PrefetchScalarGridSpec(
            num_scalar_prefetch=0,
            grid=grid,
            in_specs=[
                pl.BlockSpec((tm, K), lambda j, i: (i, 0)),   # activations
                pl.BlockSpec((K, tn), lambda j, i: (0, j)),   # weight: outer-axis only
                pl.BlockSpec((1, tn), lambda j, i: (0, j)),   # bias
            ],
            out_specs=pl.BlockSpec((tm, tn), lambda j, i: (i, j)),
        ),
        compiler_params=pltpu.CompilerParams(
            dimension_semantics=("parallel", "parallel"),
            vmem_limit_bytes=_VMEM_LIMIT_BYTES),
    )(x, w, b)


# ----------------------------------------------------------------------------
# Sequential LSTM recurrence kernel: consumes precomputed gate pre-activations.
# ----------------------------------------------------------------------------
def _lstm_kernel(gx_ref, whh_ref, h_out_ref, h_scr, c_scr):
    """One grid step == (one batch chunk, one chunk of Tc timesteps)."""

    @pl.when(pl.program_id(1) == 0)          # start of a batch chunk's sequence
    def _():
        h_scr[...] = jnp.zeros_like(h_scr)   # matches torch.zeros initial state
        c_scr[...] = jnp.zeros_like(c_scr)

    Hp = h_scr.shape[-1]                     # multiple of 128 -> lane-aligned gates
    Tc = gx_ref.shape[0]
    whh = whh_ref[...]                       # (Hp, 4Hp) bf16, resident

    def _sigmoid(v):                         # exact; one tanh (EUP) per gate
        return 0.5 * jnp.tanh(0.5 * v) + 0.5

    def step(tau, carry):
        h, c = carry                         # f32 state
        # gates = x_t @ W_ih^T + b  (precomputed, f32)  +  h_prev @ W_hh^T (bf16 MXU)
        gates = gx_ref[tau] + jnp.dot(h.astype(jnp.bfloat16), whh,
                                      preferred_element_type=jnp.float32)
        i_g = _sigmoid(gates[:, 0 * Hp:1 * Hp])
        f_g = _sigmoid(gates[:, 1 * Hp:2 * Hp])
        g_g = jnp.tanh(gates[:, 2 * Hp:3 * Hp])
        o_g = _sigmoid(gates[:, 3 * Hp:4 * Hp])
        c_new = f_g * c + i_g * g_g          # cell state stays f32
        h_new = o_g * jnp.tanh(c_new)
        h_out_ref[tau] = h_new.astype(h_out_ref.dtype)   # lane-dense bf16 writeback
        return (h_new, c_new)

    # Cap the unroll (serially dependent chain: more unroll only raises vreg/VMEM
    # pressure once MXU/EUP latency is hidden).
    h_fin, c_fin = jax.lax.fori_loop(
        0, Tc, step, (h_scr[...], c_scr[...]), unroll=max(1, min(8, Tc)))
    h_scr[...] = h_fin
    c_scr[...] = c_fin


def lstm_recurrence(gx, w_hh_t_bf16, hidden_pad, *,
                    pipeline_budget_bytes=24 * 1024 * 1024):
    """gx: (T, B, 4*Hp) f32 pre-activations; w_hh_t_bf16: (Hp, 4*Hp) bf16.

    Returns hidden states (T, B, Hp) in bf16 (halves the writeback traffic;
    they are consumed as bf16 MXU operands by the output Linear anyway)."""
    T, B, Gp = gx.shape
    Hp = hidden_pad
    assert Gp == 4 * Hp

    # Batch chunks: batch elements are independent through the LSTM, so a
    # leading "parallel" axis lets v7x's two TensorCores split the recurrence.
    if B >= 16 and B % 16 == 0:
        Bc = B // 2
    else:
        Bc = B

    # Size the time chunk from the VMEM budget: double-buffered gx-in (f32) and
    # h-out (bf16) blocks, leaving room for the resident W_hh and h/c scratch.
    whh_bytes = 2 * Hp * Gp * 2
    state_bytes = 2 * Bc * Hp * 4
    per_step = 2 * Bc * (Gp * 4 + Hp * 2)
    avail = min(pipeline_budget_bytes,
                _VMEM_LIMIT_BYTES - whh_bytes - state_bytes - 4 * 1024 * 1024)
    avail = max(avail, per_step)
    tc_cap = max(1, avail // per_step)
    # NOTE: for prime T this can degrade to Tc=1 (correct but slow); pad T upstream
    # if that matters.
    Tc = _largest_divisor_leq(T, min(tc_cap, 64, T))

    return pl.pallas_call(
        _lstm_kernel,
        out_shape=jax.ShapeDtypeStruct((T, B, Hp), jnp.bfloat16),
        grid_spec=pltpu.PrefetchScalarGridSpec(
            num_scalar_prefetch=0,
            grid=(B // Bc, T // Tc),
            in_specs=[
                pl.BlockSpec((Tc, Bc, Gp), lambda b, t: (t, b, 0)),  # gate pre-acts
                pl.BlockSpec((Hp, Gp), lambda b, t: (0, 0)),         # W_hh^T resident
            ],
            out_specs=pl.BlockSpec((Tc, Bc, Hp), lambda b, t: (t, b, 0)),
            scratch_shapes=[
                pltpu.VMEM((Bc, Hp), jnp.float32),   # h, carried across time chunks
                pltpu.VMEM((Bc, Hp), jnp.float32),   # c (kept f32)
            ],
        ),
        compiler_params=pltpu.CompilerParams(
            dimension_semantics=("parallel", "arbitrary"),   # time is sequential
            vmem_limit_bytes=_VMEM_LIMIT_BYTES),
    )(gx, w_hh_t_bf16)


# ----------------------------------------------------------------------------
# Full forward pass (DecoderRNN.forward).
# ----------------------------------------------------------------------------
def decoder_rnn_forward(features, captions, params):
    """features: (B, E) f32, captions: (B, Tcap) int32 -> logits (B, Tcap, V) f32."""
    wemb = params["wemb"]          # (V, E)
    w_ih_t = params["w_ih_t"]      # (E, 4H) == W_ih.T
    w_hh_t = params["w_hh_t"]      # (H, 4H) == W_hh.T
    b_gate = params["b_gate"]      # (1, 4H) == b_ih + b_hh
    w_out_t = params["w_out_t"]    # (H, V)  == W_linear.T
    b_out = params["b_out"]        # (1, V)

    B, E = features.shape
    H = w_hh_t.shape[0]
    V = w_out_t.shape[1]
    Hp = _round_up(H, _LANE)       # lane-align each gate / hidden dim
    pad = Hp - H

    # Pad parameters per gate.  Padded lanes carry exactly zero through the cell:
    # zero pre-activation -> g=tanh(0)=0, so c_pad stays 0 and h_pad = o*tanh(0) = 0.
    w_ih_p = jnp.pad(w_ih_t.reshape(E, 4, H),
                     ((0, 0), (0, 0), (0, pad))).reshape(E, 4 * Hp)
    w_hh_p = jnp.pad(w_hh_t.reshape(H, 4, H),
                     ((0, pad), (0, 0), (0, pad))).reshape(Hp, 4 * Hp)
    b_gate_p = jnp.pad(b_gate.reshape(1, 4, H),
                       ((0, 0), (0, 0), (0, pad))).reshape(1, 4 * Hp)
    w_out_p = jnp.pad(w_out_t, ((0, pad), (0, 0)))               # (Hp, V)

    # Build the LSTM input directly TIME-MAJOR (no big activation transpose).
    # TODO(synk): the embedding gather + concat could be fused into the input
    # projection kernel via PrefetchScalarGridSpec(num_scalar_prefetch=1) and a
    # pl.Element row-gather BlockSpec, avoiding the x_tm materialization in HBM.
    tok_tm = captions[:, :-1].T                                  # (T-1, B)
    emb_tm = jnp.take(wemb, tok_tm, axis=0)                      # (T-1, B, E)
    x_tm = jnp.concatenate([features[None], emb_tm], axis=0)     # (T, B, E)
    T = x_tm.shape[0]

    # (1) hoisted input projection + folded bias: bf16 MXU operands, f32 accumulate.
    gx = matmul_bias(x_tm.reshape(T * B, E).astype(jnp.bfloat16),
                     w_ih_p.astype(jnp.bfloat16),
                     b_gate_p)                                   # (T*B, 4Hp) f32
    gx = gx.reshape(T, B, 4 * Hp)

    # (2) sequential recurrence (only h @ W_hh^T + nonlinearities per step).
    h_tm = lstm_recurrence(gx, w_hh_p.astype(jnp.bfloat16), Hp)  # (T, B, Hp) bf16

    # (3) transpose the SMALL hidden tensor (not the big logits tensor), then the
    #     V-tiled output Linear with the vocab weight streamed from HBM once.
    h_bt = jnp.transpose(h_tm, (1, 0, 2)).reshape(B * T, Hp)     # bf16
    logits = matmul_bias(h_bt, w_out_p.astype(jnp.bfloat16), b_out)   # (B*T, V) f32
    return logits.reshape(B, T, V)                               # already (B, T, V)


# ----------------------------------------------------------------------------
# Pure-JAX f32 reference (mirrors PyTorch nn.LSTM / nn.Linear semantics).
# ----------------------------------------------------------------------------
def _reference_forward(features, captions, params):
    wemb = params["wemb"]
    w_ih_t, w_hh_t = params["w_ih_t"], params["w_hh_t"]
    b_gate, w_out_t, b_out = params["b_gate"], params["w_out_t"], params["b_out"]
    B, E = features.shape
    H = w_hh_t.shape[0]

    tok = captions[:, :-1]
    emb = jnp.take(wemb, tok, axis=0)
    x = jnp.concatenate([features[:, None, :], emb], axis=1)

    def step(carry, x_t):
        h, c = carry
        gates = x_t @ w_ih_t + h @ w_hh_t + b_gate
        i = jax.nn.sigmoid(gates[:, 0 * H:1 * H])
        f = jax.nn.sigmoid(gates[:, 1 * H:2 * H])
        g = jnp.tanh(gates[:, 2 * H:3 * H])
        o = jax.nn.sigmoid(gates[:, 3 * H:4 * H])
        c = f * c + i * g
        h = o * jnp.tanh(c)
        return (h, c), h @ w_out_t + b_out

    h0 = jnp.zeros((B, H), jnp.float32)
    c0 = jnp.zeros((B, H), jnp.float32)
    _, ys = jax.lax.scan(step, (h0, c0), jnp.transpose(x, (1, 0, 2)))
    return jnp.transpose(ys, (1, 0, 2))


def init_params(key, embed_size, hidden_size, vocab_size):
    ks = jax.random.split(key, 6)
    s = 0.1
    w_ih = s * jax.random.normal(ks[0], (4 * hidden_size, embed_size), jnp.float32)
    w_hh = s * jax.random.normal(ks[1], (4 * hidden_size, hidden_size), jnp.float32)
    b_ih = s * jax.random.normal(ks[2], (4 * hidden_size,), jnp.float32)
    b_hh = s * jax.random.normal(ks[3], (4 * hidden_size,), jnp.float32)
    w_lin = s * jax.random.normal(ks[4], (vocab_size, hidden_size), jnp.float32)
    b_lin = s * jax.random.normal(ks[5], (vocab_size,), jnp.float32)
    wemb = s * jax.random.normal(key, (vocab_size, embed_size), jnp.float32)
    return {
        "wemb": wemb,
        "w_ih_t": w_ih.T,                              # (E, 4H)
        "w_hh_t": w_hh.T,                              # (H, 4H)
        "b_gate": (b_ih + b_hh)[None, :],              # (1, 4H)
        "w_out_t": w_lin.T,                            # (H, V)
        "b_out": b_lin[None, :],                       # (1, V)
    }


if __name__ == "__main__":
    EMBED, HIDDEN, VOCAB = 32, 32, 128   # small demo shapes; H is padded to 128 inside
    B, TCAP = 2, 8                       # LSTM sees 8 steps (1 feature + 7 tokens)

    key = jax.random.PRNGKey(0)
    k_feat, k_cap, k_par = jax.random.split(key, 3)

    features = jax.random.normal(k_feat, (B, EMBED), jnp.float32)
    captions = jax.random.randint(k_cap, (B, TCAP), 0, VOCAB, jnp.int32)
    params = init_params(k_par, EMBED, HIDDEN, VOCAB)

    fwd = jax.jit(decoder_rnn_forward)
    logits = fwd(features, captions, params)
    jax.block_until_ready(logits)

    ref = _reference_forward(features, captions, params)
    assert logits.shape == (B, TCAP, VOCAB)
    # bf16 MXU operands (f32 accumulation / f32 cell state) -> slightly looser
    # tolerance than a pure-f32 comparison.
    assert jnp.allclose(logits, ref, atol=3e-2, rtol=3e-2), \
        float(jnp.max(jnp.abs(logits - ref)))

    print("KERNEL_OK")
</pallas_src>

<mosaic_0001>
module attributes {stable_mosaic.version = 11 : i64} {
  func.func @_matmul_bias_kernel(%arg0: i32, %arg1: i32, %arg2: memref<16x32xbf16, #tpu.memory_space<vmem>>, %arg3: memref<32x512xbf16, #tpu.memory_space<vmem>>, %arg4: memref<1x512xf32, #tpu.memory_space<vmem>>, %arg5: memref<16x512xf32, #tpu.memory_space<vmem>>) attributes {dimension_semantics = [#tpu.dimension_semantics<parallel>, #tpu.dimension_semantics<parallel>], iteration_bounds = array<i64: 1, 1>, scalar_prefetch = 0 : i64, scratch_operands = 0 : i64, tpu.core_type = #tpu.core_type<tc>, window_params = [{transform_indices = @transform_0, window_bounds = array<i64: 16, 32>}, {transform_indices = @transform_1, window_bounds = array<i64: 32, 512>}, {transform_indices = @transform_2, window_bounds = array<i64: 1, 512>}, {transform_indices = @transform_3, window_bounds = array<i64: 16, 512>}]} {
    %c0 = arith.constant 0 : index
    %c0_0 = arith.constant 0 : index
    %0 = vector.load %arg2[%c0, %c0_0] : memref<16x32xbf16, #tpu.memory_space<vmem>>, vector<16x32xbf16>
    %c0_1 = arith.constant 0 : index
    %c0_2 = arith.constant 0 : index
    %1 = vector.load %arg3[%c0_1, %c0_2] : memref<32x512xbf16, #tpu.memory_space<vmem>>, vector<32x512xbf16>
    %cst = arith.constant dense<0.000000e+00> : vector<16x512xf32>
    %2 = tpu.matmul %0, %1, %cst {dimension_numbers = #tpu.dot_dimension_numbers<[1], [0], [0], [1], [0, 0, 1, 1], [], []>} : vector<16x32xbf16>, vector<32x512xbf16>, vector<16x512xf32> -> vector<16x512xf32>
    %c0_3 = arith.constant 0 : index
    %c0_4 = arith.constant 0 : index
    %3 = vector.load %arg4[%c0_3, %c0_4] : memref<1x512xf32, #tpu.memory_space<vmem>>, vector<1x512xf32>
    %4 = vector.broadcast %3 : vector<1x512xf32> to vector<16x512xf32>
    %5 = arith.addf %2, %4 : vector<16x512xf32>
    %c0_5 = arith.constant 0 : index
    %c0_6 = arith.constant 0 : index
    %6 = vector.load %arg5[%c0_5, %c0_6] : memref<16x512xf32, #tpu.memory_space<vmem>>, vector<16x512xf32>
    tpu.vector_store %arg5[%c0_5, %c0_6], %5 {strides = array<i32>} : memref<16x512xf32, #tpu.memory_space<vmem>>, vector<16x512xf32>,
    return
  }
  func.func @transform_0(%arg0: i32, %arg1: i32) -> (i32, i32) {
    %c0_i32 = arith.constant 0 : i32
    %c0_i32_0 = arith.constant 0 : i32
    return %arg1, %c0_i32 : i32, i32
  }
  func.func @transform_1(%arg0: i32, %arg1: i32) -> (i32, i32) {
    %c0_i32 = arith.constant 0 : i32
    %c0_i32_0 = arith.constant 0 : i32
    return %c0_i32, %arg0 : i32, i32
  }
  func.func @transform_2(%arg0: i32, %arg1: i32) -> (i32, i32) {
    %c0_i32 = arith.constant 0 : i32
    %c0_i32_0 = arith.constant 0 : i32
    return %c0_i32, %arg0 : i32, i32
  }
  func.func @transform_3(%arg0: i32, %arg1: i32) -> (i32, i32) {
    %c0_i32 = arith.constant 0 : i32
    return %arg1, %arg0 : i32, i32
  }
}

module attributes {stable_mosaic.version = 11 : i64} {
  func.func @_matmul_bias_kernel(%arg0: i32, %arg1: i32, %arg2: memref<16x128xbf16, #tpu.memory_space<vmem>>, %arg3: memref<128x128xbf16, #tpu.memory_space<vmem>>, %arg4: memref<1x128xf32, #tpu.memory_space<vmem>>, %arg5: memref<16x128xf32, #tpu.memory_space<vmem>>) attributes {dimension_semantics = [#tpu.dimension_semantics<parallel>, #tpu.dimension_semantics<parallel>], iteration_bounds = array<i64: 1, 1>, scalar_prefetch = 0 : i64, scratch_operands = 0 : i64, tpu.core_type = #tpu.core_type<tc>, window_params = [{transform_indices = @transform_0, window_bounds = array<i64: 16, 128>}, {transform_indices = @transform_1, window_bounds = array<i64: 128, 128>}, {transform_indices = @transform_2, window_bounds = array<i64: 1, 128>}, {transform_indices = @transform_3, window_bounds = array<i64: 16, 128>}]} {
    %c0 = arith.constant 0 : index
    %c0_0 = arith.constant 0 : index
    %0 = vector.load %arg2[%c0, %c0_0] : memref<16x128xbf16, #tpu.memory_space<vmem>>, vector<16x128xbf16>
    %c0_1 = arith.constant 0 : index
    %c0_2 = arith.constant 0 : index
    %1 = vector.load %arg3[%c0_1, %c0_2] : memref<128x128xbf16, #tpu.memory_space<vmem>>, vector<128x128xbf16>
    %cst = arith.constant dense<0.000000e+00> : vector<16x128xf32>
    %2 = tpu.matmul %0, %1, %cst {dimension_numbers = #tpu.dot_dimension_numbers<[1], [0], [0], [1], [0, 0, 1, 1], [], []>} : vector<16x128xbf16>, vector<128x128xbf16>, vector<16x128xf32> -> vector<16x128xf32>
    %c0_3 = arith.constant 0 : index
    %c0_4 = arith.constant 0 : index
    %3 = vector.load %arg4[%c0_3, %c0_4] : memref<1x128xf32, #tpu.memory_space<vmem>>, vector<1x128xf32>
    %4 = vector.broadcast %3 : vector<1x128xf32> to vector<16x128xf32>
    %5 = arith.addf %2, %4 : vector<16x128xf32>
    %c0_5 = arith.constant 0 : index
    %c0_6 = arith.constant 0 : index
    %6 = vector.load %arg5[%c0_5, %c0_6] : memref<16x128xf32, #tpu.memory_space<vmem>>, vector<16x128xf32>
    tpu.vector_store %arg5[%c0_5, %c0_6], %5 {strides = array<i32>} : memref<16x128xf32, #tpu.memory_space<vmem>>, vector<16x128xf32>,
    return
  }
  func.func @transform_0(%arg0: i32, %arg1: i32) -> (i32, i32) {
    %c0_i32 = arith.constant 0 : i32
    %c0_i32_0 = arith.constant 0 : i32
    return %arg1, %c0_i32 : i32, i32
  }
  func.func @transform_1(%arg0: i32, %arg1: i32) -> (i32, i32) {
    %c0_i32 = arith.constant 0 : i32
    %c0_i32_0 = arith.constant 0 : i32
    return %c0_i32, %arg0 : i32, i32
  }
  func.func @transform_2(%arg0: i32, %arg1: i32) -> (i32, i32) {
    %c0_i32 = arith.constant 0 : i32
    %c0_i32_0 = arith.constant 0 : i32
    return %c0_i32, %arg0 : i32, i32
  }
  func.func @transform_3(%arg0: i32, %arg1: i32) -> (i32, i32) {
    %c0_i32 = arith.constant 0 : i32
    return %arg1, %arg0 : i32, i32
  }
}

module attributes {stable_mosaic.version = 11 : i64} {
  func.func @_lstm_kernel(%arg0: i32, %arg1: i32, %arg2: memref<8x2x512xf32, #tpu.memory_space<vmem>>, %arg3: memref<128x512xbf16, #tpu.memory_space<vmem>>, %arg4: memref<8x2x128xbf16, #tpu.memory_space<vmem>>, %arg5: memref<2x128xf32, #tpu.memory_space<vmem>>, %arg6: memref<2x128xf32, #tpu.memory_space<vmem>>) attributes {dimension_semantics = [#tpu.dimension_semantics<parallel>, #tpu.dimension_semantics<arbitrary>], iteration_bounds = array<i64: 1, 1>, scalar_prefetch = 0 : i64, scratch_operands = 2 : i64, tpu.core_type = #tpu.core_type<tc>, window_params = [{transform_indices = @transform_0, window_bounds = array<i64: 8, 2, 512>}, {pipeline_mode = #tpu.pipeline_mode<synchronous>, transform_indices = @transform_1, window_bounds = array<i64: 128, 512>}, {transform_indices = @transform_2, window_bounds = array<i64: 8, 2, 128>}]} {
    %c0_i32 = arith.constant 0 : i32
    %0 = arith.cmpi eq, %arg1, %c0_i32 : i32
    %1 = arith.extui %0 : i1 to i32
    %c0_i32_0 = arith.constant 0 : i32
    %2 = arith.cmpi ne, %1, %c0_i32_0 : i32
    scf.if %2 {
      %cst_122 = arith.constant 0.000000e+00 : f32
      %344 = vector.broadcast %cst_122 : f32 to vector<2x128xf32>
      %c0_123 = arith.constant 0 : index
      %c0_124 = arith.constant 0 : index
      %345 = vector.load %arg5[%c0_123, %c0_124] : memref<2x128xf32, #tpu.memory_space<vmem>>, vector<2x128xf32>
      tpu.vector_store %arg5[%c0_123, %c0_124], %344 {strides = array<i32>} : memref<2x128xf32, #tpu.memory_space<vmem>>, vector<2x128xf32>,
      %cst_125 = arith.constant 0.000000e+00 : f32
      %346 = vector.broadcast %cst_125 : f32 to vector<2x128xf32>
      %c0_126 = arith.constant 0 : index
      %c0_127 = arith.constant 0 : index
      %347 = vector.load %arg6[%c0_126, %c0_127] : memref<2x128xf32, #tpu.memory_space<vmem>>, vector<2x128xf32>
      tpu.vector_store %arg6[%c0_126, %c0_127], %346 {strides = array<i32>} : memref<2x128xf32, #tpu.memory_space<vmem>>, vector<2x128xf32>,
    } else {
    }
    %c0 = arith.constant 0 : index
    %c0_1 = arith.constant 0 : index
    %3 = vector.load %arg3[%c0, %c0_1] : memref<128x512xbf16, #tpu.memory_space<vmem>>, vector<128x512xbf16>
    %c0_2 = arith.constant 0 : index
    %c0_3 = arith.constant 0 : index
    %4 = vector.load %arg5[%c0_2, %c0_3] : memref<2x128xf32, #tpu.memory_space<vmem>>, vector<2x128xf32>
    %c0_4 = arith.constant 0 : index
    %c0_5 = arith.constant 0 : index
    %5 = vector.load %arg6[%c0_4, %c0_5] : memref<2x128xf32, #tpu.memory_space<vmem>>, vector<2x128xf32>
    %c0_i32_6 = arith.constant 0 : i32
    %6 = arith.index_cast %c0_i32_6 : i32 to index
    %c0_7 = arith.constant 0 : index
    %c0_8 = arith.constant 0 : index
    %7 = vector.load %arg2[%6, %c0_7, %c0_8] : memref<8x2x512xf32, #tpu.memory_space<vmem>>, vector<1x2x512xf32>
    %8 = vector.shape_cast %7 : vector<1x2x512xf32> to vector<2x512xf32>
    %9 = arith.truncf %4 : vector<2x128xf32> to vector<2x128xbf16>
    %cst = arith.constant dense<0.000000e+00> : vector<2x512xf32>
    %10 = tpu.matmul %9, %3, %cst {dimension_numbers = #tpu.dot_dimension_numbers<[1], [0], [0], [1], [0, 0, 1, 1], [], []>} : vector<2x128xbf16>, vector<128x512xbf16>, vector<2x512xf32> -> vector<2x512xf32>
    %11 = arith.addf %8, %10 : vector<2x512xf32>
    %12 = vector.extract_strided_slice %11 {offsets = [0, 0], sizes = [2, 128], strides = [1, 1]} : vector<2x512xf32> to vector<2x128xf32>
    %cst_9 = arith.constant 5.000000e-01 : f32
    %13 = vector.broadcast %cst_9 : f32 to vector<2x128xf32>
    %14 = arith.mulf %13, %12 : vector<2x128xf32>
    %15 = math.tanh %14 : vector<2x128xf32>
    %cst_10 = arith.constant 5.000000e-01 : f32
    %16 = vector.broadcast %cst_10 : f32 to vector<2x128xf32>
    %17 = arith.mulf %16, %15 : vector<2x128xf32>
    %cst_11 = arith.constant 5.000000e-01 : f32
    %18 = vector.broadcast %cst_11 : f32 to vector<2x128xf32>
    %19 = arith.addf %17, %18 : vector<2x128xf32>
    %20 = vector.extract_strided_slice %11 {offsets = [0, 128], sizes = [2, 128], strides = [1, 1]} : vector<2x512xf32> to vector<2x128xf32>
    %cst_12 = arith.constant 5.000000e-01 : f32
    %21 = vector.broadcast %cst_12 : f32 to vector<2x128xf32>
    %22 = arith.mulf %21, %20 : vector<2x128xf32>
    %23 = math.tanh %22 : vector<2x128xf32>
    %cst_13 = arith.constant 5.000000e-01 : f32
    %24 = vector.broadcast %cst_13 : f32 to vector<2x128xf32>
    %25 = arith.mulf %24, %23 : vector<2x128xf32>
    %cst_14 = arith.constant 5.000000e-01 : f32
    %26 = vector.broadcast %cst_14 : f32 to vector<2x128xf32>
    %27 = arith.addf %25, %26 : vector<2x128xf32>
    %28 = vector.extract_strided_slice %11 {offsets = [0, 256], sizes = [2, 128], strides = [1, 1]} : vector<2x512xf32> to vector<2x128xf32>
    %29 = math.tanh %28 : vector<2x128xf32>
    %30 = vector.extract_strided_slice %11 {offsets = [0, 384], sizes = [2, 128], strides = [1, 1]} : vector<2x512xf32> to vector<2x128xf32>
    %cst_15 = arith.constant 5.000000e-01 : f32
    %31 = vector.broadcast %cst_15 : f32 to vector<2x128xf32>
    %32 = arith.mulf %31, %30 : vector<2x128xf32>
    %33 = math.tanh %32 : vector<2x128xf32>
    %cst_16 = arith.constant 5.000000e-01 : f32
    %34 = vector.broadcast %cst_16 : f32 to vector<2x128xf32>
    %35 = arith.mulf %34, %33 : vector<2x128xf32>
    %cst_17 = arith.constant 5.000000e-01 : f32
    %36 = vector.broadcast %cst_17 : f32 to vector<2x128xf32>
    %37 = arith.addf %35, %36 : vector<2x128xf32>
    %38 = arith.mulf %27, %5 : vector<2x128xf32>
    %39 = arith.mulf %19, %29 : vector<2x128xf32>
    %40 = arith.addf %38, %39 : vector<2x128xf32>
    %41 = math.tanh %40 : vector<2x128xf32>
    %42 = arith.mulf %37, %41 : vector<2x128xf32>
    %43 = arith.truncf %42 : vector<2x128xf32> to vector<2x128xbf16>
    %44 = arith.index_cast %c0_i32_6 : i32 to index
    %c0_18 = arith.constant 0 : index
    %c0_19 = arith.constant 0 : index
    %45 = vector.load %arg4[%44, %c0_18, %c0_19] : memref<8x2x128xbf16, #tpu.memory_space<vmem>>, vector<1x2x128xbf16>
    %46 = vector.shape_cast %45 : vector<1x2x128xbf16> to vector<2x128xbf16>
    %47 = vector.shape_cast %43 : vector<2x128xbf16> to vector<1x2x128xbf16>
    tpu.vector_store %arg4[%44, %c0_18, %c0_19], %47 {strides = array<i32>} : memref<8x2x128xbf16, #tpu.memory_space<vmem>>, vector<1x2x128xbf16>,
    %c1_i32 = arith.constant 1 : i32
    %48 = arith.index_cast %c1_i32 : i32 to index
    %c0_20 = arith.constant 0 : index
    %c0_21 = arith.constant 0 : index
    %49 = vector.load %arg2[%48, %c0_20, %c0_21] : memref<8x2x512xf32, #tpu.memory_space<vmem>>, vector<1x2x512xf32>
    %50 = vector.shape_cast %49 : vector<1x2x512xf32> to vector<2x512xf32>
    %51 = arith.truncf %42 : vector<2x128xf32> to vector<2x128xbf16>
    %cst_22 = arith.constant dense<0.000000e+00> : vector<2x512xf32>
    %52 = tpu.matmul %51, %3, %cst_22 {dimension_numbers = #tpu.dot_dimension_numbers<[1], [0], [0], [1], [0, 0, 1, 1], [], []>} : vector<2x128xbf16>, vector<128x512xbf16>, vector<2x512xf32> -> vector<2x512xf32>
    %53 = arith.addf %50, %52 : vector<2x512xf32>
    %54 = vector.extract_strided_slice %53 {offsets = [0, 0], sizes = [2, 128], strides = [1, 1]} : vector<2x512xf32> to vector<2x128xf32>
    %cst_23 = arith.constant 5.000000e-01 : f32
    %55 = vector.broadcast %cst_23 : f32 to vector<2x128xf32>
    %56 = arith.mulf %55, %54 : vector<2x128xf32>
    %57 = math.tanh %56 : vector<2x128xf32>
    %cst_24 = arith.constant 5.000000e-01 : f32
    %58 = vector.broadcast %cst_24 : f32 to vector<2x128xf32>
    %59 = arith.mulf %58, %57 : vector<2x128xf32>
    %cst_25 = arith.constant 5.000000e-01 : f32
    %60 = vector.broadcast %cst_25 : f32 to vector<2x128xf32>
    %61 = arith.addf %59, %60 : vector<2x128xf32>
    %62 = vector.extract_strided_slice %53 {offsets = [0, 128], sizes = [2, 128], strides = [1, 1]} : vector<2x512xf32> to vector<2x128xf32>
    %cst_26 = arith.constant 5.000000e-01 : f32
    %63 = vector.broadcast %cst_26 : f32 to vector<2x128xf32>
    %64 = arith.mulf %63, %62 : vector<2x128xf32>
    %65 = math.tanh %64 : vector<2x128xf32>
    %cst_27 = arith.constant 5.000000e-01 : f32
    %66 = vector.broadcast %cst_27 : f32 to vector<2x128xf32>
    %67 = arith.mulf %66, %65 : vector<2x128xf32>
    %cst_28 = arith.constant 5.000000e-01 : f32
    %68 = vector.broadcast %cst_28 : f32 to vector<2x128xf32>
    %69 = arith.addf %67, %68 : vector<2x128xf32>
    %70 = vector.extract_strided_slice %53 {offsets = [0, 256], sizes = [2, 128], strides = [1, 1]} : vector<2x512xf32> to vector<2x128xf32>
    %71 = math.tanh %70 : vector<2x128xf32>
    %72 = vector.extract_strided_slice %53 {offsets = [0, 384], sizes = [2, 128], strides = [1, 1]} : vector<2x512xf32> to vector<2x128xf32>
    %cst_29 = arith.constant 5.000000e-01 : f32
    %73 = vector.broadcast %cst_29 : f32 to vector<2x128xf32>
    %74 = arith.mulf %73, %72 : vector<2x128xf32>
    %75 = math.tanh %74 : vector<2x128xf32>
    %cst_30 = arith.constant 5.000000e-01 : f32
    %76 = vector.broadcast %cst_30 : f32 to vector<2x128xf32>
    %77 = arith.mulf %76, %75 : vector<2x128xf32>
    %cst_31 = arith.constant 5.000000e-01 : f32
    %78 = vector.broadcast %cst_31 : f32 to vector<2x128xf32>
    %79 = arith.addf %77, %78 : vector<2x128xf32>
    %80 = arith.mulf %69, %40 : vector<2x128xf32>
    %81 = arith.mulf %61, %71 : vector<2x128xf32>
    %82 = arith.addf %80, %81 : vector<2x128xf32>
    %83 = math.tanh %82 : vector<2x128xf32>
    %84 = arith.mulf %79, %83 : vector<2x128xf32>
    %85 = arith.truncf %84 : vector<2x128xf32> to vector<2x128xbf16>
    %86 = arith.index_cast %c1_i32 : i32 to index
    %c0_32 = arith.constant 0 : index
    %c0_33 = arith.constant 0 : index
    %87 = vector.load %arg4[%86, %c0_32, %c0_33] : memref<8x2x128xbf16, #tpu.memory_space<vmem>>, vector<1x2x128xbf16>
    %88 = vector.shape_cast %87 : vector<1x2x128xbf16> to vector<2x128xbf16>
    %89 = vector.shape_cast %85 : vector<2x128xbf16> to vector<1x2x128xbf16>
    tpu.vector_store %arg4[%86, %c0_32, %c0_33], %89 {strides = array<i32>} : memref<8x2x128xbf16, #tpu.memory_space<vmem>>, vector<1x2x128xbf16>,
    %c2_i32 = arith.constant 2 : i32
    %90 = arith.index_cast %c2_i32 : i32 to index
    %c0_34 = arith.constant 0 : index
    %c0_35 = arith.constant 0 : index
    %91 = vector.load %arg2[%90, %c0_34, %c0_35] : memref<8x2x512xf32, #tpu.memory_space<vmem>>, vector<1x2x512xf32>
    %92 = vector.shape_cast %91 : vector<1x2x512xf32> to vector<2x512xf32>
    %93 = arith.truncf %84 : vector<2x128xf32> to vector<2x128xbf16>
    %cst_36 = arith.constant dense<0.000000e+00> : vector<2x512xf32>
    %94 = tpu.matmul %93, %3, %cst_36 {dimension_numbers = #tpu.dot_dimension_numbers<[1], [0], [0], [1], [0, 0, 1, 1], [], []>} : vector<2x128xbf16>, vector<128x512xbf16>, vector<2x512xf32> -> vector<2x512xf32>
    %95 = arith.addf %92, %94 : vector<2x512xf32>
    %96 = vector.extract_strided_slice %95 {offsets = [0, 0], sizes = [2, 128], strides = [1, 1]} : vector<2x512xf32> to vector<2x128xf32>
    %cst_37 = arith.constant 5.000000e-01 : f32
    %97 = vector.broadcast %cst_37 : f32 to vector<2x128xf32>
    %98 = arith.mulf %97, %96 : vector<2x128xf32>
    %99 = math.tanh %98 : vector<2x128xf32>
    %cst_38 = arith.constant 5.000000e-01 : f32
    %100 = vector.broadcast %cst_38 : f32 to vector<2x128xf32>
    %101 = arith.mulf %100, %99 : vector<2x128xf32>
    %cst_39 = arith.constant 5.000000e-01 : f32
    %102 = vector.broadcast %cst_39 : f32 to vector<2x128xf32>
    %103 = arith.addf %101, %102 : vector<2x128xf32>
    %104 = vector.extract_strided_slice %95 {offsets = [0, 128], sizes = [2, 128], strides = [1, 1]} : vector<2x512xf32> to vector<2x128xf32>
    %cst_40 = arith.constant 5.000000e-01 : f32
    %105 = vector.broadcast %cst_40 : f32 to vector<2x128xf32>
    %106 = arith.mulf %105, %104 : vector<2x128xf32>
    %107 = math.tanh %106 : vector<2x128xf32>
    %cst_41 = arith.constant 5.000000e-01 : f32
    %108 = vector.broadcast %cst_41 : f32 to vector<2x128xf32>
    %109 = arith.mulf %108, %107 : vector<2x128xf32>
    %cst_42 = arith.constant 5.000000e-01 : f32
    %110 = vector.broadcast %cst_42 : f32 to vector<2x128xf32>
    %111 = arith.addf %109, %110 : vector<2x128xf32>
    %112 = vector.extract_strided_slice %95 {offsets = [0, 256], sizes = [2, 128], strides = [1, 1]} : vector<2x512xf32> to vector<2x128xf32>
    %113 = math.tanh %112 : vector<2x128xf32>
    %114 = vector.extract_strided_slice %95 {offsets = [0, 384], sizes = [2, 128], strides = [1, 1]} : vector<2x512xf32> to vector<2x128xf32>
    %cst_43 = arith.constant 5.000000e-01 : f32
    %115 = vector.broadcast %cst_43 : f32 to vector<2x128xf32>
    %116 = arith.mulf %115, %114 : vector<2x128xf32>
    %117 = math.tanh %116 : vector<2x128xf32>
    %cst_44 = arith.constant 5.000000e-01 : f32
    %118 = vector.broadcast %cst_44 : f32 to vector<2x128xf32>
    %119 = arith.mulf %118, %117 : vector<2x128xf32>
    %cst_45 = arith.constant 5.000000e-01 : f32
    %120 = vector.broadcast %cst_45 : f32 to vector<2x128xf32>
    %121 = arith.addf %119, %120 : vector<2x128xf32>
    %122 = arith.mulf %111, %82 : vector<2x128xf32>
    %123 = arith.mulf %103, %113 : vector<2x128xf32>
    %124 = arith.addf %122, %123 : vector<2x128xf32>
    %125 = math.tanh %124 : vector<2x128xf32>
    %126 = arith.mulf %121, %125 : vector<2x128xf32>
    %127 = arith.truncf %126 : vector<2x128xf32> to vector<2x128xbf16>
    %128 = arith.index_cast %c2_i32 : i32 to index
    %c0_46 = arith.constant 0 : index
    %c0_47 = arith.constant 0 : index
    %129 = vector.load %arg4[%128, %c0_46, %c0_47] : memref<8x2x128xbf16, #tpu.memory_space<vmem>>, vector<1x2x128xbf16>
    %130 = vector.shape_cast %129 : vector<1x2x128xbf16> to vector<2x128xbf16>
    %131 = vector.shape_cast %127 : vector<2x128xbf16> to vector<1x2x128xbf16>
    tpu.vector_store %arg4[%128, %c0_46, %c0_47], %131 {strides = array<i32>} : memref<8x2x128xbf16, #tpu.memory_space<vmem>>, vector<1x2x128xbf16>,
    %c3_i32 = arith.constant 3 : i32
    %132 = arith.index_cast %c3_i32 : i32 to index
    %c0_48 = arith.constant 0 : index
    %c0_49 = arith.constant 0 : index
    %133 = vector.load %arg2[%132, %c0_48, %c0_49] : memref<8x2x512xf32, #tpu.memory_space<vmem>>, vector<1x2x512xf32>
    %134 = vector.shape_cast %133 : vector<1x2x512xf32> to vector<2x512xf32>
    %135 = arith.truncf %126 : vector<2x128xf32> to vector<2x128xbf16>
    %cst_50 = arith.constant dense<0.000000e+00> : vector<2x512xf32>
    %136 = tpu.matmul %135, %3, %cst_50 {dimension_numbers = #tpu.dot_dimension_numbers<[1], [0], [0], [1], [0, 0, 1, 1], [], []>} : vector<2x128xbf16>, vector<128x512xbf16>, vector<2x512xf32> -> vector<2x512xf32>
    %137 = arith.addf %134, %136 : vector<2x512xf32>
    %138 = vector.extract_strided_slice %137 {offsets = [0, 0], sizes = [2, 128], strides = [1, 1]} : vector<2x512xf32> to vector<2x128xf32>
    %cst_51 = arith.constant 5.000000e-01 : f32
    %139 = vector.broadcast %cst_51 : f32 to vector<2x128xf32>
    %140 = arith.mulf %139, %138 : vector<2x128xf32>
    %141 = math.tanh %140 : vector<2x128xf32>
    %cst_52 = arith.constant 5.000000e-01 : f32
    %142 = vector.broadcast %cst_52 : f32 to vector<2x128xf32>
    %143 = arith.mulf %142, %141 : vector<2x128xf32>
    %cst_53 = arith.constant 5.000000e-01 : f32
    %144 = vector.broadcast %cst_53 : f32 to vector<2x128xf32>
    %145 = arith.addf %143, %144 : vector<2x128xf32>
    %146 = vector.extract_strided_slice %137 {offsets = [0, 128], sizes = [2, 128], strides = [1, 1]} : vector<2x512xf32> to vector<2x128xf32>
    %cst_54 = arith.constant 5.000000e-01 : f32
    %147 = vector.broadcast %cst_54 : f32 to vector<2x128xf32>
    %148 = arith.mulf %147, %146 : vector<2x128xf32>
    %149 = math.tanh %148 : vector<2x128xf32>
    %cst_55 = arith.constant 5.000000e-01 : f32
    %150 = vector.broadcast %cst_55 : f32 to vector<2x128xf32>
    %151 = arith.mulf %150, %149 : vector<2x128xf32>
    %cst_56 = arith.constant 5.000000e-01 : f32
    %152 = vector.broadcast %cst_56 : f32 to vector<2x128xf32>
    %153 = arith.addf %151, %152 : vector<2x128xf32>
    %154 = vector.extract_strided_slice %137 {offsets = [0, 256], sizes = [2, 128], strides = [1, 1]} : vector<2x512xf32> to vector<2x128xf32>
    %155 = math.tanh %154 : vector<2x128xf32>
    %156 = vector.extract_strided_slice %137 {offsets = [0, 384], sizes = [2, 128], strides = [1, 1]} : vector<2x512xf32> to vector<2x128xf32>
    %cst_57 = arith.constant 5.000000e-01 : f32
    %157 = vector.broadcast %cst_57 : f32 to vector<2x128xf32>
    %158 = arith.mulf %157, %156 : vector<2x128xf32>
    %159 = math.tanh %158 : vector<2x128xf32>
    %cst_58 = arith.constant 5.000000e-01 : f32
    %160 = vector.broadcast %cst_58 : f32 to vector<2x128xf32>
    %161 = arith.mulf %160, %159 : vector<2x128xf32>
    %cst_59 = arith.constant 5.000000e-01 : f32
    %162 = vector.broadcast %cst_59 : f32 to vector<2x128xf32>
    %163 = arith.addf %161, %162 : vector<2x128xf32>
    %164 = arith.mulf %153, %124 : vector<2x128xf32>
    %165 = arith.mulf %145, %155 : vector<2x128xf32>
    %166 = arith.addf %164, %165 : vector<2x128xf32>
    %167 = math.tanh %166 : vector<2x128xf32>
    %168 = arith.mulf %163, %167 : vector<2x128xf32>
    %169 = arith.truncf %168 : vector<2x128xf32> to vector<2x128xbf16>
    %170 = arith.index_cast %c3_i32 : i32 to index
    %c0_60 = arith.constant 0 : index
    %c0_61 = arith.constant 0 : index
    %171 = vector.load %arg4[%170, %c0_60, %c0_61] : memref<8x2x128xbf16, #tpu.memory_space<vmem>>, vector<1x2x128xbf16>
    %172 = vector.shape_cast %171 : vector<1x2x128xbf16> to vector<2x128xbf16>
    %173 = vector.shape_cast %169 : vector<2x128xbf16> to vector<1x2x128xbf16>
    tpu.vector_store %arg4[%170, %c0_60, %c0_61], %173 {strides = array<i32>} : memref<8x2x128xbf16, #tpu.memory_space<vmem>>, vector<1x2x128xbf16>,
    %c4_i32 = arith.constant 4 : i32
    %174 = arith.index_cast %c4_i32 : i32 to index
    %c0_62 = arith.constant 0 : index
    %c0_63 = arith.constant 0 : index
    %175 = vector.load %arg2[%174, %c0_62, %c0_63] : memref<8x2x512xf32, #tpu.memory_space<vmem>>, vector<1x2x512xf32>
    %176 = vector.shape_cast %175 : vector<1x2x512xf32> to vector<2x512xf32>
    %177 = arith.truncf %168 : vector<2x128xf32> to vector<2x128xbf16>
    %cst_64 = arith.constant dense<0.000000e+00> : vector<2x512xf32>
    %178 = tpu.matmul %177, %3, %cst_64 {dimension_numbers = #tpu.dot_dimension_numbers<[1], [0], [0], [1], [0, 0, 1, 1], [], []>} : vector<2x128xbf16>, vector<128x512xbf16>, vector<2x512xf32> -> vector<2x512xf32>
    %179 = arith.addf %176, %178 : vector<2x512xf32>
    %180 = vector.extract_strided_slice %179 {offsets = [0, 0], sizes = [2, 128], strides = [1, 1]} : vector<2x512xf32> to vector<2x128xf32>
    %cst_65 = arith.constant 5.000000e-01 : f32
    %181 = vector.broadcast %cst_65 : f32 to vector<2x128xf32>
    %182 = arith.mulf %181, %180 : vector<2x128xf32>
    %183 = math.tanh %182 : vector<2x128xf32>
    %cst_66 = arith.constant 5.000000e-01 : f32
    %184 = vector.broadcast %cst_66 : f32 to vector<2x128xf32>
    %185 = arith.mulf %184, %183 : vector<2x128xf32>
    %cst_67 = arith.constant 5.000000e-01 : f32
    %186 = vector.broadcast %cst_67 : f32 to vector<2x128xf32>
    %187 = arith.addf %185, %186 : vector<2x128xf32>
    %188 = vector.extract_strided_slice %179 {offsets = [0, 128], sizes = [2, 128], strides = [1, 1]} : vector<2x512xf32> to vector<2x128xf32>
    %cst_68 = arith.constant 5.000000e-01 : f32
    %189 = vector.broadcast %cst_68 : f32 to vector<2x128xf32>
    %190 = arith.mulf %189, %188 : vector<2x128xf32>
    %191 = math.tanh %190 : vector<2x128xf32>
    %cst_69 = arith.constant 5.000000e-01 : f32
    %192 = vector.broadcast %cst_69 : f32 to vector<2x128xf32>
    %193 = arith.mulf %192, %191 : vector<2x128xf32>
    %cst_70 = arith.constant 5.000000e-01 : f32
    %194 = vector.broadcast %cst_70 : f32 to vector<2x128xf32>
    %195 = arith.addf %193, %194 : vector<2x128xf32>
    %196 = vector.extract_strided_slice %179 {offsets = [0, 256], sizes = [2, 128], strides = [1, 1]} : vector<2x512xf32> to vector<2x128xf32>
    %197 = math.tanh %196 : vector<2x128xf32>
    %198 = vector.extract_strided_slice %179 {offsets = [0, 384], sizes = [2, 128], strides = [1, 1]} : vector<2x512xf32> to vector<2x128xf32>
    %cst_71 = arith.constant 5.000000e-01 : f32
    %199 = vector.broadcast %cst_71 : f32 to vector<2x128xf32>
    %200 = arith.mulf %199, %198 : vector<2x128xf32>
    %201 = math.tanh %200 : vector<2x128xf32>
    %cst_72 = arith.constant 5.000000e-01 : f32
    %202 = vector.broadcast %cst_72 : f32 to vector<2x128xf32>
    %203 = arith.mulf %202, %201 : vector<2x128xf32>
    %cst_73 = arith.constant 5.000000e-01 : f32
    %204 = vector.broadcast %cst_73 : f32 to vector<2x128xf32>
    %205 = arith.addf %203, %204 : vector<2x128xf32>
    %206 = arith.mulf %195, %166 : vector<2x128xf32>
    %207 = arith.mulf %187, %197 : vector<2x128xf32>
    %208 = arith.addf %206, %207 : vector<2x128xf32>
    %209 = math.tanh %208 : vector<2x128xf32>
    %210 = arith.mulf %205, %209 : vector<2x128xf32>
    %211 = arith.truncf %210 : vector<2x128xf32> to vector<2x128xbf16>
    %212 = arith.index_cast %c4_i32 : i32 to index
    %c0_74 = arith.constant 0 : index
    %c0_75 = arith.constant 0 : index
    %213 = vector.load %arg4[%212, %c0_74, %c0_75] : memref<8x2x128xbf16, #tpu.memory_space<vmem>>, vector<1x2x128xbf16>
    %214 = vector.shape_cast %213 : vector<1x2x128xbf16> to vector<2x128xbf16>
    %215 = vector.shape_cast %211 : vector<2x128xbf16> to vector<1x2x128xbf16>
    tpu.vector_store %arg4[%212, %c0_74, %c0_75], %215 {strides = array<i32>} : memref<8x2x128xbf16, #tpu.memory_space<vmem>>, vector<1x2x128xbf16>,
    %c5_i32 = arith.constant 5 : i32
    %216 = arith.index_cast %c5_i32 : i32 to index
    %c0_76 = arith.constant 0 : index
    %c0_77 = arith.constant 0 : index
    %217 = vector.load %arg2[%216, %c0_76, %c0_77] : memref<8x2x512xf32, #tpu.memory_space<vmem>>, vector<1x2x512xf32>
    %218 = vector.shape_cast %217 : vector<1x2x512xf32> to vector<2x512xf32>
    %219 = arith.truncf %210 : vector<2x128xf32> to vector<2x128xbf16>
    %cst_78 = arith.constant dense<0.000000e+00> : vector<2x512xf32>
    %220 = tpu.matmul %219, %3, %cst_78 {dimension_numbers = #tpu.dot_dimension_numbers<[1], [0], [0], [1], [0, 0, 1, 1], [], []>} : vector<2x128xbf16>, vector<128x512xbf16>, vector<2x512xf32> -> vector<2x512xf32>
    %221 = arith.addf %218, %220 : vector<2x512xf32>
    %222 = vector.extract_strided_slice %221 {offsets = [0, 0], sizes = [2, 128], strides = [1, 1]} : vector<2x512xf32> to vector<2x128xf32>
    %cst_79 = arith.constant 5.000000e-01 : f32
    %223 = vector.broadcast %cst_79 : f32 to vector<2x128xf32>
    %224 = arith.mulf %223, %222 : vector<2x128xf32>
    %225 = math.tanh %224 : vector<2x128xf32>
    %cst_80 = arith.constant 5.000000e-01 : f32
    %226 = vector.broadcast %cst_80 : f32 to vector<2x128xf32>
    %227 = arith.mulf %226, %225 : vector<2x128xf32>
    %cst_81 = arith.constant 5.000000e-01 : f32
    %228 = vector.broadcast %cst_81 : f32 to vector<2x128xf32>
    %229 = arith.addf %227, %228 : vector<2x128xf32>
    %230 = vector.extract_strided_slice %221 {offsets = [0, 128], sizes = [2, 128], strides = [1, 1]} : vector<2x512xf32> to vector<2x128xf32>
    %cst_82 = arith.constant 5.000000e-01 : f32
    %231 = vector.broadcast %cst_82 : f32 to vector<2x128xf32>
    %232 = arith.mulf %231, %230 : vector<2x128xf32>
    %233 = math.tanh %232 : vector<2x128xf32>
    %cst_83 = arith.constant 5.000000e-01 : f32
    %234 = vector.broadcast %cst_83 : f32 to vector<2x128xf32>
    %235 = arith.mulf %234, %233 : vector<2x128xf32>
    %cst_84 = arith.constant 5.000000e-01 : f32
    %236 = vector.broadcast %cst_84 : f32 to vector<2x128xf32>
    %237 = arith.addf %235, %236 : vector<2x128xf32>
    %238 = vector.extract_strided_slice %221 {offsets = [0, 256], sizes = [2, 128], strides = [1, 1]} : vector<2x512xf32> to vector<2x128xf32>
    %239 = math.tanh %238 : vector<2x128xf32>
    %240 = vector.extract_strided_slice %221 {offsets = [0, 384], sizes = [2, 128], strides = [1, 1]} : vector<2x512xf32> to vector<2x128xf32>
    %cst_85 = arith.constant 5.000000e-01 : f32
    %241 = vector.broadcast %cst_85 : f32 to vector<2x128xf32>
    %242 = arith.mulf %241, %240 : vector<2x128xf32>
    %243 = math.tanh %242 : vector<2x128xf32>
    %cst_86 = arith.constant 5.000000e-01 : f32
    %244 = vector.broadcast %cst_86 : f32 to vector<2x128xf32>
    %245 = arith.mulf %244, %243 : vector<2x128xf32>
    %cst_87 = arith.constant 5.000000e-01 : f32
    %246 = vector.broadcast %cst_87 : f32 to vector<2x128xf32>
    %247 = arith.addf %245, %246 : vector<2x128xf32>
    %248 = arith.mulf %237, %208 : vector<2x128xf32>
    %249 = arith.mulf %229, %239 : vector<2x128xf32>
    %250 = arith.addf %248, %249 : vector<2x128xf32>
    %251 = math.tanh %250 : vector<2x128xf32>
    %252 = arith.mulf %247, %251 : vector<2x128xf32>
    %253 = arith.truncf %252 : vector<2x128xf32> to vector<2x128xbf16>
    %254 = arith.index_cast %c5_i32 : i32 to index
    %c0_88 = arith.constant 0 : index
    %c0_89 = arith.constant 0 : index
    %255 = vector.load %arg4[%254, %c0_88, %c0_89] : memref<8x2x128xbf16, #tpu.memory_space<vmem>>, vector<1x2x128xbf16>
    %256 = vector.shape_cast %255 : vector<1x2x128xbf16> to vector<2x128xbf16>
    %257 = vector.shape_cast %253 : vector<2x128xbf16> to vector<1x2x128xbf16>
    tpu.vector_store %arg4[%254, %c0_88, %c0_89], %257 {strides = array<i32>} : memref<8x2x128xbf16, #tpu.memory_space<vmem>>, vector<1x2x128xbf16>,
    %c6_i32 = arith.constant 6 : i32
    %258 = arith.index_cast %c6_i32 : i32 to index
    %c0_90 = arith.constant 0 : index
    %c0_91 = arith.constant 0 : index
    %259 = vector.load %arg2[%258, %c0_90, %c0_91] : memref<8x2x512xf32, #tpu.memory_space<vmem>>, vector<1x2x512xf32>
    %260 = vector.shape_cast %259 : vector<1x2x512xf32> to vector<2x512xf32>
    %261 = arith.truncf %252 : vector<2x128xf32> to vector<2x128xbf16>
    %cst_92 = arith.constant dense<0.000000e+00> : vector<2x512xf32>
    %262 = tpu.matmul %261, %3, %cst_92 {dimension_numbers = #tpu.dot_dimension_numbers<[1], [0], [0], [1], [0, 0, 1, 1], [], []>} : vector<2x128xbf16>, vector<128x512xbf16>, vector<2x512xf32> -> vector<2x512xf32>
    %263 = arith.addf %260, %262 : vector<2x512xf32>
    %264 = vector.extract_strided_slice %263 {offsets = [0, 0], sizes = [2, 128], strides = [1, 1]} : vector<2x512xf32> to vector<2x128xf32>
    %cst_93 = arith.constant 5.000000e-01 : f32
    %265 = vector.broadcast %cst_93 : f32 to vector<2x128xf32>
    %266 = arith.mulf %265, %264 : vector<2x128xf32>
    %267 = math.tanh %266 : vector<2x128xf32>
    %cst_94 = arith.constant 5.000000e-01 : f32
    %268 = vector.broadcast %cst_94 : f32 to vector<2x128xf32>
    %269 = arith.mulf %268, %267 : vector<2x128xf32>
    %cst_95 = arith.constant 5.000000e-01 : f32
    %270 = vector.broadcast %cst_95 : f32 to vector<2x128xf32>
    %271 = arith.addf %269, %270 : vector<2x128xf32>
    %272 = vector.extract_strided_slice %263 {offsets = [0, 128], sizes = [2, 128], strides = [1, 1]} : vector<2x512xf32> to vector<2x128xf32>
    %cst_96 = arith.constant 5.000000e-01 : f32
    %273 = vector.broadcast %cst_96 : f32 to vector<2x128xf32>
    %274 = arith.mulf %273, %272 : vector<2x128xf32>
    %275 = math.tanh %274 : vector<2x128xf32>
    %cst_97 = arith.constant 5.000000e-01 : f32
    %276 = vector.broadcast %cst_97 : f32 to vector<2x128xf32>
    %277 = arith.mulf %276, %275 : vector<2x128xf32>
    %cst_98 = arith.constant 5.000000e-01 : f32
    %278 = vector.broadcast %cst_98 : f32 to vector<2x128xf32>
    %279 = arith.addf %277, %278 : vector<2x128xf32>
    %280 = vector.extract_strided_slice %263 {offsets = [0, 256], sizes = [2, 128], strides = [1, 1]} : vector<2x512xf32> to vector<2x128xf32>
    %281 = math.tanh %280 : vector<2x128xf32>
    %282 = vector.extract_strided_slice %263 {offsets = [0, 384], sizes = [2, 128], strides = [1, 1]} : vector<2x512xf32> to vector<2x128xf32>
    %cst_99 = arith.constant 5.000000e-01 : f32
    %283 = vector.broadcast %cst_99 : f32 to vector<2x128xf32>
    %284 = arith.mulf %283, %282 : vector<2x128xf32>
    %285 = math.tanh %284 : vector<2x128xf32>
    %cst_100 = arith.constant 5.000000e-01 : f32
    %286 = vector.broadcast %cst_100 : f32 to vector<2x128xf32>
    %287 = arith.mulf %286, %285 : vector<2x128xf32>
    %cst_101 = arith.constant 5.000000e-01 : f32
    %288 = vector.broadcast %cst_101 : f32 to vector<2x128xf32>
    %289 = arith.addf %287, %288 : vector<2x128xf32>
    %290 = arith.mulf %279, %250 : vector<2x128xf32>
    %291 = arith.mulf %271, %281 : vector<2x128xf32>
    %292 = arith.addf %290, %291 : vector<2x128xf32>
    %293 = math.tanh %292 : vector<2x128xf32>
    %294 = arith.mulf %289, %293 : vector<2x128xf32>
    %295 = arith.truncf %294 : vector<2x128xf32> to vector<2x128xbf16>
    %296 = arith.index_cast %c6_i32 : i32 to index
    %c0_102 = arith.constant 0 : index
    %c0_103 = arith.constant 0 : index
    %297 = vector.load %arg4[%296, %c0_102, %c0_103] : memref<8x2x128xbf16, #tpu.memory_space<vmem>>, vector<1x2x128xbf16>
    %298 = vector.shape_cast %297 : vector<1x2x128xbf16> to vector<2x128xbf16>
    %299 = vector.shape_cast %295 : vector<2x128xbf16> to vector<1x2x128xbf16>
    tpu.vector_store %arg4[%296, %c0_102, %c0_103], %299 {strides = array<i32>} : memref<8x2x128xbf16, #tpu.memory_space<vmem>>, vector<1x2x128xbf16>,
    %c7_i32 = arith.constant 7 : i32
    %300 = arith.index_cast %c7_i32 : i32 to index
    %c0_104 = arith.constant 0 : index
    %c0_105 = arith.constant 0 : index
    %301 = vector.load %arg2[%300, %c0_104, %c0_105] : memref<8x2x512xf32, #tpu.memory_space<vmem>>, vector<1x2x512xf32>
    %302 = vector.shape_cast %301 : vector<1x2x512xf32> to vector<2x512xf32>
    %303 = arith.truncf %294 : vector<2x128xf32> to vector<2x128xbf16>
    %cst_106 = arith.constant dense<0.000000e+00> : vector<2x512xf32>
    %304 = tpu.matmul %303, %3, %cst_106 {dimension_numbers = #tpu.dot_dimension_numbers<[1], [0], [0], [1], [0, 0, 1, 1], [], []>} : vector<2x128xbf16>, vector<128x512xbf16>, vector<2x512xf32> -> vector<2x512xf32>
    %305 = arith.addf %302, %304 : vector<2x512xf32>
    %306 = vector.extract_strided_slice %305 {offsets = [0, 0], sizes = [2, 128], strides = [1, 1]} : vector<2x512xf32> to vector<2x128xf32>
    %cst_107 = arith.constant 5.000000e-01 : f32
    %307 = vector.broadcast %cst_107 : f32 to vector<2x128xf32>
    %308 = arith.mulf %307, %306 : vector<2x128xf32>
    %309 = math.tanh %308 : vector<2x128xf32>
    %cst_108 = arith.constant 5.000000e-01 : f32
    %310 = vector.broadcast %cst_108 : f32 to vector<2x128xf32>
    %311 = arith.mulf %310, %309 : vector<2x128xf32>
    %cst_109 = arith.constant 5.000000e-01 : f32
    %312 = vector.broadcast %cst_109 : f32 to vector<2x128xf32>
    %313 = arith.addf %311, %312 : vector<2x128xf32>
    %314 = vector.extract_strided_slice %305 {offsets = [0, 128], sizes = [2, 128], strides = [1, 1]} : vector<2x512xf32> to vector<2x128xf32>
    %cst_110 = arith.constant 5.000000e-01 : f32
    %315 = vector.broadcast %cst_110 : f32 to vector<2x128xf32>
    %316 = arith.mulf %315, %314 : vector<2x128xf32>
    %317 = math.tanh %316 : vector<2x128xf32>
    %cst_111 = arith.constant 5.000000e-01 : f32
    %318 = vector.broadcast %cst_111 : f32 to vector<2x128xf32>
    %319 = arith.mulf %318, %317 : vector<2x128xf32>
    %cst_112 = arith.constant 5.000000e-01 : f32
    %320 = vector.broadcast %cst_112 : f32 to vector<2x128xf32>
    %321 = arith.addf %319, %320 : vector<2x128xf32>
    %322 = vector.extract_strided_slice %305 {offsets = [0, 256], sizes = [2, 128], strides = [1, 1]} : vector<2x512xf32> to vector<2x128xf32>
    %323 = math.tanh %322 : vector<2x128xf32>
    %324 = vector.extract_strided_slice %305 {offsets = [0, 384], sizes = [2, 128], strides = [1, 1]} : vector<2x512xf32> to vector<2x128xf32>
    %cst_113 = arith.constant 5.000000e-01 : f32
    %325 = vector.broadcast %cst_113 : f32 to vector<2x128xf32>
    %326 = arith.mulf %325, %324 : vector<2x128xf32>
    %327 = math.tanh %326 : vector<2x128xf32>
    %cst_114 = arith.constant 5.000000e-01 : f32
    %328 = vector.broadcast %cst_114 : f32 to vector<2x128xf32>
    %329 = arith.mulf %328, %327 : vector<2x128xf32>
    %cst_115 = arith.constant 5.000000e-01 : f32
    %330 = vector.broadcast %cst_115 : f32 to vector<2x128xf32>
    %331 = arith.addf %329, %330 : vector<2x128xf32>
    %332 = arith.mulf %321, %292 : vector<2x128xf32>
    %333 = arith.mulf %313, %323 : vector<2x128xf32>
    %334 = arith.addf %332, %333 : vector<2x128xf32>
    %335 = math.tanh %334 : vector<2x128xf32>
    %336 = arith.mulf %331, %335 : vector<2x128xf32>
    %337 = arith.truncf %336 : vector<2x128xf32> to vector<2x128xbf16>
    %338 = arith.index_cast %c7_i32 : i32 to index
    %c0_116 = arith.constant 0 : index
    %c0_117 = arith.constant 0 : index
    %339 = vector.load %arg4[%338, %c0_116, %c0_117] : memref<8x2x128xbf16, #tpu.memory_space<vmem>>, vector<1x2x128xbf16>
    %340 = vector.shape_cast %339 : vector<1x2x128xbf16> to vector<2x128xbf16>
    %341 = vector.shape_cast %337 : vector<2x128xbf16> to vector<1x2x128xbf16>
    tpu.vector_store %arg4[%338, %c0_116, %c0_117], %341 {strides = array<i32>} : memref<8x2x128xbf16, #tpu.memory_space<vmem>>, vector<1x2x128xbf16>,
    %c8_i32 = arith.constant 8 : i32
    %c0_118 = arith.constant 0 : index
    %c0_119 = arith.constant 0 : index
    %342 = vector.load %arg5[%c0_118, %c0_119] : memref<2x128xf32, #tpu.memory_space<vmem>>, vector<2x128xf32>
    tpu.vector_store %arg5[%c0_118, %c0_119], %336 {strides = array<i32>} : memref<2x128xf32, #tpu.memory_space<vmem>>, vector<2x128xf32>,
    %c0_120 = arith.constant 0 : index
    %c0_121 = arith.constant 0 : index
    %343 = vector.load %arg6[%c0_120, %c0_121] : memref<2x128xf32, #tpu.memory_space<vmem>>, vector<2x128xf32>
    tpu.vector_store %arg6[%c0_120, %c0_121], %334 {strides = array<i32>} : memref<2x128xf32, #tpu.memory_space<vmem>>, vector<2x128xf32>,
    return
  }
  func.func @transform_0(%arg0: i32, %arg1: i32) -> (i32, i32, i32) {
    %c0_i32 = arith.constant 0 : i32
    %c0_i32_0 = arith.constant 0 : i32
    return %arg1, %arg0, %c0_i32 : i32, i32, i32
  }
  func.func @transform_1(%arg0: i32, %arg1: i32) -> (i32, i32) {
    %c0_i32 = arith.constant 0 : i32
    %c0_i32_0 = arith.constant 0 : i32
    %c0_i32_1 = arith.constant 0 : i32
    return %c0_i32, %c0_i32_0 : i32, i32
  }
  func.func @transform_2(%arg0: i32, %arg1: i32) -> (i32, i32, i32) {
    %c0_i32 = arith.constant 0 : i32
    %c0_i32_0 = arith.constant 0 : i32
    return %arg1, %arg0, %c0_i32 : i32, i32, i32
  }
}

</mosaic_0001>

<bundles_post_ra>
// kernel: decoder_rnn_forward.5
= control target key start
LH: loop header
LB: loop body
LE: loop exit
PB: predicated region body
PF: predicated region fallthrough
CT: control target
= control target key end

     0   :  { %v229_v1 = vmov 0.0   ;;  %vm230_vm0 = vmmov 0   ;;  %s287_s0 = inlined_call_operand.vmem [shape: bf16[16,128], index: 0, kind: input, shape index: {}]   ;;  %s288_s1 = inlined_call_operand.vmem [shape: bf16[128,128], index: 1, kind: input, shape index: {}]   ;;  %s289_s2 = inlined_call_operand.vmem [shape: f32[1,128], index: 2, kind: input, shape index: {}]   ;;  %s290_s3 = inlined_call_operand.hbm [shape: f32[16,128], index: 3, kind: output, shape index: {}]  }
   0x1   :  { %v198_v0 = vld [vmem:[%s288_s1 + $0x38] sm:$0xff]   ;;  %173 = vmatprep.subr.bf16.mxu0 %v229_v1  ;;  %v199_v2 = vld [vmem:[%s288_s1 + $0x30] sm:$0xff]   ;;  %189 = vmatprep.mubr.msk.bf16.mxu0 %vm230_vm0, %v229_v1  ;;  %v200_v3 = vld [vmem:[%s288_s1 + $0x28] sm:$0xff]  }
   0x2   :  { %174 = vmatpush3.bf16.msra.mxu0 %v198_v0 }
   0x3   :  { %175 = vmatprep.subr.bf16.mxu0 %v229_v1 }
   0x6   :  { %176 = vmatpush3.bf16.msra.mxu0 %v199_v2 }
   0x7   :  { %177 = vmatprep.subr.bf16.mxu0 %v229_v1 }
   0x8   :  { %8 = vsyncpa [#allocation3], 0  ;;  %v201_v4 = vld [vmem:[%s288_s1 + $0x20] sm:$0xff]   ;;  %v202_v5 = vld [vmem:[%s288_s1 + $0x18] sm:$0xff]   ;;  %s231_s5 = smov [#allocation2]  }
   0x9   :  { %v203_v6 = vld [vmem:[%s288_s1 + $0x10] sm:$0xff]   ;;  %v204_v7 = vld [vmem:[%s288_s1 + $0x8] sm:$0xff]   ;;  %v205_v8 = vld [vmem:[%s288_s1] sm:$0xff]   ;;  %s143_s6 = sshll.u32 %s231_s5, 4  ;;  %s144_s6 = int_to_ptr.vmem [resolvable:$true] %s143_s6 }
   0xa   :  { %178 = vmatpush3.bf16.msra.mxu0 %v200_v3  ;;  %v206_v9 = vld [vmem:[%s287_s0] sm:$0xff]   ;;  %s207_s1 = scalar_lea.vmem %s144_s6, 256  ;;  %p212_p1 = scmp.lt.s32.totalorder %s144_s6, %s144_s6 }
   0xb   :  { %179 = vmatprep.subr.bf16.mxu0 %v229_v1  ;;  %v154_v10 = vld [vmem:[%s289_s2] ss:$0 sm:$0xff]  ;;  %p208_p0 = scmp.ne.s32.totalorder %s144_s6, %s207_s1  ;;  %p213_p2 = scmp.lt.s32.totalorder %s207_s1, %s207_s1 }
   0xd   :  { %p214_p3 = por %p213_p2, %p212_p1 }
   0xe   :  { %180 = vmatpush3.bf16.msra.mxu0 %v201_v4 }
   0xf   :  { %181 = vmatprep.subr.bf16.mxu0 %v229_v1  ;;  %p215_p4 = pnand %p214_p3, %p208_p0 }
  0x12   :  { %182 = vmatpush3.bf16.msra.mxu0 %v202_v5 }
  0x13   :  { %183 = vmatprep.subr.bf16.mxu0 %v229_v1 }
  0x16   :  { %184 = vmatpush3.bf16.msra.mxu0 %v203_v6 }
  0x17   :  { %185 = vmatprep.subr.bf16.mxu0 %v229_v1 }
  0x1a   :  { %186 = vmatpush3.bf16.msra.mxu0 %v204_v7 }
  0x1b   :  { %187 = vmatprep.subr.bf16.mxu0 %v229_v1 }
  0x1e   :  { %188 = vmatpush3.bf16.msra.mxu0 %v205_v8 }
  0x21   :  { %190 = vmatmul.mubr.bf16.vlgmr.msra.gmra.mxu0 %v206_v9 }
  0xe1   :  { %v129_v11 = vpop.f32.mrf.mxu0 }
  0xe2   :  { %v130_v12 = vadd.f32 %v154_v10, %v129_v11 }
  0xe3   :  { %v191_v13 = vpop.f32.mrf.mxu0 }
  0xe4   :  { %136 = vst [vmem:[#allocation2] sm:$0xff] %v130_v12 }
  0xe5   :  { %v132_v14 = vpop.f32.mrf.mxu0 }
  0xe6   :  { %v133_v15 = vadd.f32 %v154_v10, %v132_v14 }
  0xe7   :  { %v192_v16 = vpop.f32.mrf.mxu0 }
  0xe8   :  { %137 = vst [vmem:[#allocation2 + $0x8] sm:$0xff] %v133_v15 }
  0xe9   :  { %218 = shalt.err (!%p215_p4)
}
  0xea   :  { %s232_s0 = smov 128   ;;  %s233_s2 = smov 8  }
  0xeb   :  { %149 = dma.vmem_to_hbm [thread:$0]  %s144_s6, 256, %s290_s3, [#allocation3], %s232_s0, %s232_s0, %s233_s2  }
  0xec   :  { %227 = dma.done.wait [#allocation3], 256  }
  0xed   :  { %228 = vsyncadd [#allocation3], 4294967040 }
  0xee   :  { %153 = vsyncpa [#allocation3], 1 }

// kernel: decoder_rnn_forward.3
= control target key start
LH: loop header
LB: loop body
LE: loop exit
PB: predicated region body
PF: predicated region fallthrough
CT: control target
= control target key end

     0   :  { %v219_v1 = vmov 0   ;;  %vm92_vm0 = vcmask 261120   ;;  %v27_v10 = vlaneseq  ;;  %s294_s1 = inlined_call_operand.vmem [shape: bf16[32,512], index: 1, kind: input, shape index: {}]   ;;  %s295_s0 = inlined_call_operand.vmem [shape: bf16[16,32], index: 0, kind: input, shape index: {}]   ;;  %s296_s2 = inlined_call_operand.vmem [shape: f32[1,512], index: 2, kind: input, shape index: {}]   ;;  %s297_s3 = inlined_call_operand.vmem [shape: f32[16,512], index: 3, kind: output, shape index: {}]  }
   0x1   :  { %v206_v0 = vld [vmem:[%s294_s1 + $0x24] ss:$16 sps:$4 sm:$0xff]   ;;  %128 = vmatprep.mubr.bf16.mxu0 %v219_v1  ;;  %171 = vmatprep.mubr.bf16.mxu1 %v219_v1  ;;  %v208_v2 = vld [vmem:[%s294_s1 + $0x2c] ss:$16 sps:$4 sm:$0xff]   ;;  %v210_v3 = vld [vmem:[%s294_s1 + $0x20] ss:$16 sps:$4 sm:$0xff]  }
   0x2   :  { %108 = vmatprep.subr.bf16.mxu0 %v206_v0  ;;  %v211_v4 = vld [vmem:[%s294_s1 + $0x28] ss:$16 sps:$4 sm:$0xff]   ;;  %151 = vmatprep.subr.bf16.mxu1 %v208_v2  ;;  %v212_v5 = vld [vmem:[%s294_s1 + $0x4] ss:$16 sps:$4 sm:$0xff]   ;;  %v214_v6 = vld [vmem:[%s294_s1 + $0xc] ss:$16 sps:$4 sm:$0xff]  }
   0x3   :  { %109 = vmatpush1.bf16.msra.mxu0 %v210_v3  ;;  %152 = vmatpush1.bf16.msra.mxu1 %v211_v4  ;;  %v216_v7 = vld [vmem:[%s294_s1] ss:$16 sps:$4 sm:$0xff]   ;;  %v217_v8 = vld [vmem:[%s294_s1 + $0x8] ss:$16 sps:$4 sm:$0xff]   ;;  %v28_v11 = vshrl.u32 %v27_v10, 7 }
   0x4   :  { %110 = vmatprep.subr.bf16.mxu0 %v212_v5  ;;  %153 = vmatprep.subr.bf16.mxu1 %v214_v6  ;;  %v218_v9 = vld [vmem:[%s295_s0] sm:$0xff]  }
   0x5   :  { %v29_v12 = vsub.s32 0, %v28_v11  ;;  %v37_v13 = vsub.s32 2, %v28_v11  ;;  %v25_v14 = vld [vmem:[%s296_s2] sm:$0xf]  ;;  %v33_v15 = vsub.s32 1, %v28_v11  ;;  %v41_v16 = vsub.s32 3, %v28_v11 }
   0x7   :  { %111 = vmatpush1.bf16.msra.mxu0 %v216_v7  ;;  %154 = vmatpush1.bf16.msra.mxu1 %v217_v8  ;;  %v30_v17 = vrot.slane %v25_v14, %v29_v12  ;;  %v38_v18 = vrot.slane %v25_v14, %v37_v13  ;;  %v34_v19 = vrot.slane %v25_v14, %v33_v15 }
   0x8   :  { %v42_v20 = vrot.slane %v25_v14, %v41_v16 }
   0xa   :  { %203 = vmatmul.mubr.msk.bf16.vlgmr.msra.gmra.mxu0 %vm92_vm0, %v218_v9  ;;  %204 = vmatmul.mubr.msk.bf16.vlgmr.msra.gmra.mxu1 %vm92_vm0, %v218_v9 }
  0xca   :  { %v130_v21 = vpop.f32.mrf.mxu0  ;;  %v173_v22 = vpop.f32.mrf.mxu1 }
  0xcb   :  { %v131_v23 = vadd.f32 %v130_v21, %v30_v17  ;;  %v174_v24 = vadd.f32 %v173_v22, %v38_v18 }
  0xcc   :  { %v132_v25 = vpop.f32.mrf.mxu0  ;;  %v175_v26 = vpop.f32.mrf.mxu1 }
  0xcd   :  { %182 = vst [vmem:[%s297_s3] sm:$0xff] %v131_v23  ;;  %184 = vst [vmem:[%s297_s3 + $0x10] sm:$0xff] %v174_v24  ;;  %v133_v27 = vadd.f32 %v132_v25, %v34_v19  ;;  %v176_v28 = vadd.f32 %v175_v26, %v42_v20 }
  0xce   :  { %v134_v29 = vpop.f32.mrf.mxu0  ;;  %v177_v30 = vpop.f32.mrf.mxu1 }
  0xcf   :  { %183 = vst [vmem:[%s297_s3 + $0x8] sm:$0xff] %v133_v27  ;;  %185 = vst [vmem:[%s297_s3 + $0x18] sm:$0xff] %v176_v28  ;;  %v135_v31 = vadd.f32 %v134_v29, %v30_v17  ;;  %v178_v32 = vadd.f32 %v177_v30, %v38_v18 }
  0xd0   :  { %v136_v33 = vpop.f32.mrf.mxu0  ;;  %v179_v34 = vpop.f32.mrf.mxu1 }
  0xd1   :  { %186 = vst [vmem:[%s297_s3 + $0x20] sm:$0xff] %v135_v31  ;;  %188 = vst [vmem:[%s297_s3 + $0x30] sm:$0xff] %v178_v32  ;;  %v137_v35 = vadd.f32 %v136_v33, %v34_v19  ;;  %v180_v36 = vadd.f32 %v179_v34, %v42_v20 }
  0xd3   :  { %187 = vst [vmem:[%s297_s3 + $0x28] sm:$0xff] %v137_v35  ;;  %189 = vst [vmem:[%s297_s3 + $0x38] sm:$0xff] %v180_v36 }

// kernel: decoder_rnn_forward.4
= control target key start
LH: loop header
LB: loop body
LE: loop exit
PB: predicated region body
PF: predicated region fallthrough
CT: control target
= control target key end

     0   :  { %v1506_v1 = vmov 0   ;;  %v1507_v2 = vmov 0.0   ;;  %v1508_v36 = vmov 1983009808   ;;  %v305_v38 = vlaneseq  ;;  %s2110_s1 = inlined_call_operand.vmem [shape: bf16[128,512], index: 1, kind: input, shape index: {}]   ;;  %s2111_s0 = inlined_call_operand.vmem [shape: f32[8,2,512], index: 0, kind: input, shape index: {}]   ;;  %s2112_s2 = inlined_call_operand.vmem [shape: bf16[8,2,128], index: 2, kind: output, shape index: {}]  }
   0x1   :  { %v1527_v0 = vld [vmem:[%s2110_s1 + $0xe4] ss:$16 sps:$4 sm:$0xff]   ;;  %246 = vmatprep.mubr.bf16.mxu0 %v1506_v1  ;;  %287 = vmatprep.mubr.bf16.mxu1 %v1506_v1  ;;  %16 = vst [vmem:[#allocation2] sm:$0x3] %v1507_v2  ;;  %17 = vst [vmem:[#allocation3] sm:$0x3] %v1507_v2  ;;  %v303_v37 = vunpack.c.l.s4 %v1508_v36 }
   0x2   :  { %v1534_v3 = vld [vmem:[%s2110_s1 + $0xec] ss:$16 sps:$4 sm:$0xff]   ;;  %214 = vmatprep.subr.bf16.mxu0 %v1527_v0  ;;  %v1540_v4 = vld [vmem:[%s2110_s1 + $0xe0] ss:$16 sps:$4 sm:$0xff]   ;;  %v1545_v5 = vld [vmem:[%s2110_s1 + $0xe8] ss:$16 sps:$4 sm:$0xff]  }
   0x3   :  { %255 = vmatprep.subr.bf16.mxu1 %v1534_v3  ;;  %v1551_v6 = vld [vmem:[%s2110_s1 + $0xc4] ss:$16 sps:$4 sm:$0xff]   ;;  %215 = vmatpush1.bf16.msra.mxu0 %v1540_v4  ;;  %v1558_v7 = vld [vmem:[%s2110_s1 + $0xcc] ss:$16 sps:$4 sm:$0xff]   ;;  %v1563_v8 = vld [vmem:[%s2110_s1 + $0xc0] ss:$16 sps:$4 sm:$0xff]   ;;  %v304_v39 = vunpack.c.0.s8 %v303_v37 }
   0x4   :  { %256 = vmatpush1.bf16.msra.mxu1 %v1545_v5  ;;  %216 = vmatprep.subr.bf16.mxu0 %v1551_v6  ;;  %v1569_v9 = vld [vmem:[%s2110_s1 + $0xc8] ss:$16 sps:$4 sm:$0xff]   ;;  %v1575_v10 = vld [vmem:[%s2110_s1 + $0xa4] ss:$16 sps:$4 sm:$0xff]   ;;  %v1580_v11 = vld [vmem:[%s2110_s1 + $0xac] ss:$16 sps:$4 sm:$0xff]  }
   0x5   :  { %257 = vmatprep.subr.bf16.mxu1 %v1558_v7  ;;  %v1585_v12 = vld [vmem:[%s2110_s1 + $0xa0] ss:$16 sps:$4 sm:$0xff]   ;;  %v1590_v13 = vld [vmem:[%s2110_s1 + $0xa8] ss:$16 sps:$4 sm:$0xff]   ;;  %v1597_v14 = vld [vmem:[%s2110_s1 + $0x84] ss:$16 sps:$4 sm:$0xff]  }
   0x6   :  { %v1604_v15 = vld [vmem:[%s2110_s1 + $0x8c] ss:$16 sps:$4 sm:$0xff]   ;;  %v1609_v16 = vld [vmem:[%s2110_s1 + $0x80] ss:$16 sps:$4 sm:$0xff]   ;;  %v1616_v17 = vld [vmem:[%s2110_s1 + $0x88] ss:$16 sps:$4 sm:$0xff]  }
   0x7   :  { %217 = vmatpush1.bf16.msra.mxu0 %v1563_v8  ;;  %v1621_v18 = vld [vmem:[%s2110_s1 + $0x64] ss:$16 sps:$4 sm:$0xff]   ;;  %v1628_v19 = vld [vmem:[%s2110_s1 + $0x6c] ss:$16 sps:$4 sm:$0xff]   ;;  %v1633_v20 = vld [vmem:[%s2110_s1 + $0x60] ss:$16 sps:$4 sm:$0xff]  }
   0x8   :  { %258 = vmatpush1.bf16.msra.mxu1 %v1569_v9  ;;  %218 = vmatprep.subr.bf16.mxu0 %v1575_v10  ;;  %v1638_v21 = vld [vmem:[%s2110_s1 + $0x68] ss:$16 sps:$4 sm:$0xff]   ;;  %v1645_v22 = vld [vmem:[%s2110_s1 + $0x44] ss:$16 sps:$4 sm:$0xff]   ;;  %v1652_v23 = vld [vmem:[%s2110_s1 + $0x4c] ss:$16 sps:$4 sm:$0xff]  }
   0x9   :  { %259 = vmatprep.subr.bf16.mxu1 %v1580_v11  ;;  %v1659_v24 = vld [vmem:[%s2110_s1 + $0x40] ss:$16 sps:$4 sm:$0xff]   ;;  %v1664_v25 = vld [vmem:[%s2110_s1 + $0x48] ss:$16 sps:$4 sm:$0xff]   ;;  %v1671_v26 = vld [vmem:[%s2110_s1 + $0x24] ss:$16 sps:$4 sm:$0xff]  }
   0xa   :  { %v1676_v27 = vld [vmem:[%s2110_s1 + $0x2c] ss:$16 sps:$4 sm:$0xff]   ;;  %v1683_v28 = vld [vmem:[%s2110_s1 + $0x20] ss:$16 sps:$4 sm:$0xff]   ;;  %v1688_v29 = vld [vmem:[%s2110_s1 + $0x28] ss:$16 sps:$4 sm:$0xff]  }
   0xb   :  { %219 = vmatpush1.bf16.msra.mxu0 %v1585_v12  ;;  %v1695_v30 = vld [vmem:[%s2110_s1 + $0x4] ss:$16 sps:$4 sm:$0xff]   ;;  %v1700_v31 = vld [vmem:[%s2110_s1 + $0xc] ss:$16 sps:$4 sm:$0xff]   ;;  %v1707_v32 = vld [vmem:[%s2110_s1] ss:$16 sps:$4 sm:$0xff]  }
   0xc   :  { %260 = vmatpush1.bf16.msra.mxu1 %v1590_v13  ;;  %220 = vmatprep.subr.bf16.mxu0 %v1597_v14  ;;  %v1712_v33 = vld [vmem:[%s2110_s1 + $0x8] ss:$16 sps:$4 sm:$0xff]   ;;  %v50_v34 = vld [vmem:[#allocation2] sm:$0x3]  ;;  %v306_v40 = vshrl.u32 %v305_v38, 7 }
   0xd   :  { %261 = vmatprep.subr.bf16.mxu1 %v1604_v15  ;;  %v53_v35 = vpack.c.bf16 %v50_v34, %v50_v34  ;;  %v52_v52 = vld [vmem:[%s2111_s0] sm:$0xff] }
   0xe   :  { %v1754_v43 = vsub.s32 %v304_v39, %v306_v40  ;;  %v51_v37 = vld [vmem:[#allocation3] sm:$0x3] }
   0xf   :  { %221 = vmatpush1.bf16.msra.mxu0 %v1609_v16 }
  0x10   :  { %262 = vmatpush1.bf16.msra.mxu1 %v1616_v17  ;;  %222 = vmatprep.subr.bf16.mxu0 %v1621_v18 }
  0x11   :  { %263 = vmatprep.subr.bf16.mxu1 %v1628_v19 }
  0x13   :  { %223 = vmatpush1.bf16.msra.mxu0 %v1633_v20 }
  0x14   :  { %264 = vmatpush1.bf16.msra.mxu1 %v1638_v21  ;;  %224 = vmatprep.subr.bf16.mxu0 %v1645_v22 }
  0x15   :  { %265 = vmatprep.subr.bf16.mxu1 %v1652_v23 }
  0x17   :  { %225 = vmatpush1.bf16.msra.mxu0 %v1659_v24 }
  0x18   :  { %266 = vmatpush1.bf16.msra.mxu1 %v1664_v25  ;;  %226 = vmatprep.subr.bf16.mxu0 %v1671_v26 }
  0x19   :  { %267 = vmatprep.subr.bf16.mxu1 %v1676_v27 }
  0x1b   :  { %227 = vmatpush1.bf16.msra.mxu0 %v1683_v28 }
  0x1c   :  { %268 = vmatpush1.bf16.msra.mxu1 %v1688_v29  ;;  %228 = vmatprep.subr.bf16.mxu0 %v1695_v30 }
  0x1d   :  { %269 = vmatprep.subr.bf16.mxu1 %v1700_v31 }
  0x1f   :  { %229 = vmatpush1.bf16.msra.mxu0 %v1707_v32 }
  0x20   :  { %270 = vmatpush1.bf16.msra.mxu1 %v1712_v33  ;;  %348 = vmatprep.subr.bf16.mxu0 %v1527_v0 }
  0x21   :  { %389 = vmatprep.subr.bf16.mxu1 %v1534_v3 }
  0x22   :  { %247 = vmatmul.mubr.bf16.vlgmr.msra.gmra.mxu0 %v53_v35 }
  0x23   :  { %288 = vmatmul.mubr.bf16.vlgmr.msra.gmra.mxu1 %v53_v35  ;;  %349 = vmatpush1.bf16.msra.mxu0 %v1540_v4 }
  0x24   :  { %390 = vmatpush1.bf16.msra.mxu1 %v1545_v5  ;;  %350 = vmatprep.subr.bf16.mxu0 %v1551_v6 }
  0x25   :  { %391 = vmatprep.subr.bf16.mxu1 %v1558_v7  ;;  %380 = vmatprep.mubr.bf16.mxu0 %v1506_v1 }
  0x26   :  { %421 = vmatprep.mubr.bf16.mxu1 %v1506_v1 }
  0x27   :  { %351 = vmatpush1.bf16.msra.mxu0 %v1563_v8 }
  0x28   :  { %392 = vmatpush1.bf16.msra.mxu1 %v1569_v9  ;;  %352 = vmatprep.subr.bf16.mxu0 %v1575_v10 }
  0x29   :  { %393 = vmatprep.subr.bf16.mxu1 %v1580_v11 }
  0x2b   :  { %353 = vmatpush1.bf16.msra.mxu0 %v1585_v12 }
  0x2c   :  { %394 = vmatpush1.bf16.msra.mxu1 %v1590_v13  ;;  %354 = vmatprep.subr.bf16.mxu0 %v1597_v14 }
  0x2d   :  { %395 = vmatprep.subr.bf16.mxu1 %v1604_v15 }
  0x2f   :  { %355 = vmatpush1.bf16.msra.mxu0 %v1609_v16 }
  0x30   :  { %396 = vmatpush1.bf16.msra.mxu1 %v1616_v17  ;;  %356 = vmatprep.subr.bf16.mxu0 %v1621_v18 }
  0x31   :  { %397 = vmatprep.subr.bf16.mxu1 %v1628_v19 }
  0x33   :  { %357 = vmatpush1.bf16.msra.mxu0 %v1633_v20 }
  0x34   :  { %398 = vmatpush1.bf16.msra.mxu1 %v1638_v21  ;;  %358 = vmatprep.subr.bf16.mxu0 %v1645_v22 }
  0x35   :  { %399 = vmatprep.subr.bf16.mxu1 %v1652_v23 }
  0x37   :  { %359 = vmatpush1.bf16.msra.mxu0 %v1659_v24 }
  0x38   :  { %400 = vmatpush1.bf16.msra.mxu1 %v1664_v25  ;;  %360 = vmatprep.subr.bf16.mxu0 %v1671_v26 }
  0x39   :  { %401 = vmatprep.subr.bf16.mxu1 %v1676_v27 }
  0x3b   :  { %361 = vmatpush1.bf16.msra.mxu0 %v1683_v28 }
  0x3c   :  { %402 = vmatpush1.bf16.msra.mxu1 %v1688_v29  ;;  %362 = vmatprep.subr.bf16.mxu0 %v1695_v30 }
  0x3d   :  { %403 = vmatprep.subr.bf16.mxu1 %v1700_v31 }
  0x3f   :  { %363 = vmatpush1.bf16.msra.mxu0 %v1707_v32 }
  0x40   :  { %404 = vmatpush1.bf16.msra.mxu1 %v1712_v33  ;;  %483 = vmatprep.subr.bf16.mxu0 %v1527_v0 }
  0x41   :  { %524 = vmatprep.subr.bf16.mxu1 %v1534_v3 }
  0xe2   :  { %v248_v41 = vpop.f32.mrf.mxu0 }
  0xe3   :  { %v289_v42 = vpop.f32.mrf.mxu1 }
  0xe4   :  { %v250_v44 = vpop.f32.mrf.mxu0 }
  0xe5   :  { %v291_v45 = vpop.f32.mrf.mxu1  ;;  %v300_v46 = vcombine.low %v248_v41, %v250_v44 }
  0xe6   :  { %v301_v47 = vcombine.low %v289_v42, %v291_v45  ;;  %v252_v48 = vpop.f32.mrf.mxu0 }
  0xe7   :  { %v293_v49 = vpop.f32.mrf.mxu1  ;;  %v308_v50 = vrot.slane %v300_v46, %v1754_v43 }
  0xe8   :  { %v315_v51 = vrot.slane %v301_v47, %v1754_v43  ;;  %v253_v53 = vpop.f32.mrf.mxu0 }
  0xe9   :  { %v294_v54 = vpop.f32.mrf.mxu1 }
  0xea   :  { %v316_v55 = vcombine.low %v308_v50, %v315_v51 }
  0xec   :  { %v318_v56 = vadd.f32 %v316_v55, %v52_v52 }
  0xee   :  { %v319_v57 = vmul.f32 0.5, %v318_v56  ;;  %v324_v58 = vrot.slane %v318_v56, 2  ;;  %v330_v60 = vrot.slane %v318_v56, 4  ;;  %v333_v61 = vrot.slane %v318_v56, 6 }
  0xf0   :  { %1394 = vtanh.f32 %v319_v57  ;;  %v326_v59 = vmul.f32 0.5, %v324_v58  ;;  %v335_v62 = vmul.f32 0.5, %v333_v61 }
  0xf2   :  { %1396 = vtanh.f32 %v326_v59 }
  0xf3   :  { %1398 = vtanh.f32 %v330_v60  ;;  %v1329_v60 = vld [vmem:[%s2111_s0 + $0x8] sm:$0xff] }
  0xf4   :  { %1400 = vtanh.f32 %v335_v62 }
  0xfd   :  { %v1395_v63 = vpop.eup %1394 }
  0xfe   :  { %v321_v2 = vmul.f32 0.5, %v1395_v63 }
  0xff   :  { %v1397_v34 = vpop.eup %1396 }
 0x100   :  { %v322_v35 = vadd.f32 0.5, %v321_v2  ;;  %v328_v36 = vmul.f32 0.5, %v1397_v34  ;;  %v1399_v39 = vpop.eup %1398 }
 0x101   :  { %v1401_v44 = vpop.eup %1400 }
 0x102   :  { %v329_v38 = vadd.f32 0.5, %v328_v36  ;;  %v340_v41 = vmul.f32 %v1399_v39, %v322_v35  ;;  %v337_v45 = vmul.f32 0.5, %v1401_v44 }
 0x104   :  { %v339_v40 = vmul.f32 %v329_v38, %v51_v37  ;;  %v338_v46 = vadd.f32 0.5, %v337_v45 }
 0x106   :  { %v1761_v42 = vadd.f32 %v340_v41, %v339_v40 }
 0x108   :  { %1402 = vtanh.f32 %v1761_v42 }
 0x115   :  { %v1403_v47 = vpop.eup %1402 }
 0x116   :  { %v343_v48 = vmul.f32 %v1403_v47, %v338_v46 }
 0x118   :  { %v344_v49 = vpack.c.bf16 %v343_v48, %v343_v48 }
 0x11a   :  { %345 = vst [vmem:[%s2112_s2] sm:$0x1] %v344_v49  ;;  %381 = vmatmul.mubr.bf16.vlgmr.msra.gmra.mxu0 %v344_v49  ;;  %422 = vmatmul.mubr.bf16.vlgmr.msra.gmra.mxu1 %v344_v49 }
 0x11b   :  { %484 = vmatpush1.bf16.msra.mxu0 %v1540_v4  ;;  %525 = vmatpush1.bf16.msra.mxu1 %v1545_v5 }
 0x11c   :  { %485 = vmatprep.subr.bf16.mxu0 %v1551_v6  ;;  %526 = vmatprep.subr.bf16.mxu1 %v1558_v7 }
 0x11d   :  { %515 = vmatprep.mubr.bf16.mxu0 %v1506_v1  ;;  %556 = vmatprep.mubr.bf16.mxu1 %v1506_v1 }
 0x11f   :  { %486 = vmatpush1.bf16.msra.mxu0 %v1563_v8  ;;  %527 = vmatpush1.bf16.msra.mxu1 %v1569_v9 }
 0x120   :  { %487 = vmatprep.subr.bf16.mxu0 %v1575_v10  ;;  %528 = vmatprep.subr.bf16.mxu1 %v1580_v11 }
 0x123   :  { %488 = vmatpush1.bf16.msra.mxu0 %v1585_v12  ;;  %529 = vmatpush1.bf16.msra.mxu1 %v1590_v13 }
 0x124   :  { %489 = vmatprep.subr.bf16.mxu0 %v1597_v14  ;;  %530 = vmatprep.subr.bf16.mxu1 %v1604_v15 }
 0x127   :  { %490 = vmatpush1.bf16.msra.mxu0 %v1609_v16  ;;  %531 = vmatpush1.bf16.msra.mxu1 %v1616_v17 }
 0x128   :  { %491 = vmatprep.subr.bf16.mxu0 %v1621_v18  ;;  %532 = vmatprep.subr.bf16.mxu1 %v1628_v19 }
 0x12b   :  { %492 = vmatpush1.bf16.msra.mxu0 %v1633_v20  ;;  %533 = vmatpush1.bf16.msra.mxu1 %v1638_v21 }
 0x12c   :  { %493 = vmatprep.subr.bf16.mxu0 %v1645_v22  ;;  %534 = vmatprep.subr.bf16.mxu1 %v1652_v23 }
 0x12f   :  { %494 = vmatpush1.bf16.msra.mxu0 %v1659_v24  ;;  %535 = vmatpush1.bf16.msra.mxu1 %v1664_v25 }
 0x130   :  { %495 = vmatprep.subr.bf16.mxu0 %v1671_v26  ;;  %536 = vmatprep.subr.bf16.mxu1 %v1676_v27 }
 0x133   :  { %496 = vmatpush1.bf16.msra.mxu0 %v1683_v28  ;;  %537 = vmatpush1.bf16.msra.mxu1 %v1688_v29 }
 0x134   :  { %497 = vmatprep.subr.bf16.mxu0 %v1695_v30  ;;  %538 = vmatprep.subr.bf16.mxu1 %v1700_v31 }
 0x137   :  { %498 = vmatpush1.bf16.msra.mxu0 %v1707_v32  ;;  %539 = vmatpush1.bf16.msra.mxu1 %v1712_v33 }
 0x138   :  { %618 = vmatprep.subr.bf16.mxu0 %v1527_v0  ;;  %659 = vmatprep.subr.bf16.mxu1 %v1534_v3 }
 0x1da   :  { %v382_v50 = vpop.f32.mrf.mxu0  ;;  %v423_v51 = vpop.f32.mrf.mxu1 }
 0x1dc   :  { %v384_v52 = vpop.f32.mrf.mxu0  ;;  %v425_v53 = vpop.f32.mrf.mxu1 }
 0x1dd   :  { %v434_v54 = vcombine.low %v382_v50, %v384_v52  ;;  %v435_v55 = vcombine.low %v423_v51, %v425_v53 }
 0x1de   :  { %v386_v56 = vpop.f32.mrf.mxu0  ;;  %v427_v57 = vpop.f32.mrf.mxu1 }
 0x1df   :  { %v442_v58 = vrot.slane %v434_v54, %v1754_v43  ;;  %v449_v59 = vrot.slane %v435_v55, %v1754_v43 }
 0x1e0   :  { %v387_v61 = vpop.f32.mrf.mxu0  ;;  %v428_v62 = vpop.f32.mrf.mxu1 }
 0x1e1   :  { %v450_v63 = vcombine.low %v442_v58, %v449_v59 }
 0x1e3   :  { %v452_v2 = vadd.f32 %v1329_v60, %v450_v63 }
 0x1e5   :  { %v453_v34 = vmul.f32 0.5, %v452_v2  ;;  %v458_v35 = vrot.slane %v452_v2, 2  ;;  %v464_v37 = vrot.slane %v452_v2, 4  ;;  %v467_v38 = vrot.slane %v452_v2, 6 }
 0x1e7   :  { %1404 = vtanh.f32 %v453_v34  ;;  %v460_v36 = vmul.f32 0.5, %v458_v35  ;;  %v469_v39 = vmul.f32 0.5, %v467_v38 }
 0x1e9   :  { %1406 = vtanh.f32 %v460_v36  ;;  %v1331_v36 = vld [vmem:[%s2111_s0 + $0x10] sm:$0xff] }
 0x1ea   :  { %1408 = vtanh.f32 %v464_v37 }
 0x1eb   :  { %1410 = vtanh.f32 %v469_v39 }
 0x1f4   :  { %v1405_v40 = vpop.eup %1404 }
 0x1f5   :  { %v455_v41 = vmul.f32 0.5, %v1405_v40 }
 0x1f6   :  { %v1407_v44 = vpop.eup %1406 }
 0x1f7   :  { %v456_v45 = vadd.f32 0.5, %v455_v41  ;;  %v462_v46 = vmul.f32 0.5, %v1407_v44  ;;  %v1409_v48 = vpop.eup %1408 }
 0x1f8   :  { %v1411_v52 = vpop.eup %1410 }
 0x1f9   :  { %v463_v47 = vadd.f32 0.5, %v462_v46  ;;  %v474_v50 = vmul.f32 %v1409_v48, %v456_v45  ;;  %v471_v53 = vmul.f32 0.5, %v1411_v52 }
 0x1fb   :  { %v473_v49 = vmul.f32 %v463_v47, %v1761_v42  ;;  %v472_v54 = vadd.f32 0.5, %v471_v53 }
 0x1fd   :  { %v1807_v51 = vadd.f32 %v474_v50, %v473_v49 }
 0x1ff   :  { %1412 = vtanh.f32 %v1807_v51 }
 0x20c   :  { %v1413_v55 = vpop.eup %1412 }
 0x20d   :  { %v477_v56 = vmul.f32 %v1413_v55, %v472_v54 }
 0x20f   :  { %v478_v57 = vpack.c.bf16 %v477_v56, %v477_v56 }
 0x211   :  { %1330 = vst [vmem:[%s2112_s2 + $0x1] sm:$0x1] %v478_v57  ;;  %516 = vmatmul.mubr.bf16.vlgmr.msra.gmra.mxu0 %v478_v57  ;;  %557 = vmatmul.mubr.bf16.vlgmr.msra.gmra.mxu1 %v478_v57 }
 0x212   :  { %619 = vmatpush1.bf16.msra.mxu0 %v1540_v4  ;;  %660 = vmatpush1.bf16.msra.mxu1 %v1545_v5 }
 0x213   :  { %620 = vmatprep.subr.bf16.mxu0 %v1551_v6  ;;  %661 = vmatprep.subr.bf16.mxu1 %v1558_v7 }
 0x214   :  { %650 = vmatprep.mubr.bf16.mxu0 %v1506_v1  ;;  %691 = vmatprep.mubr.bf16.mxu1 %v1506_v1 }
 0x216   :  { %621 = vmatpush1.bf16.msra.mxu0 %v1563_v8  ;;  %662 = vmatpush1.bf16.msra.mxu1 %v1569_v9 }
 0x217   :  { %622 = vmatprep.subr.bf16.mxu0 %v1575_v10  ;;  %663 = vmatprep.subr.bf16.mxu1 %v1580_v11 }
 0x21a   :  { %623 = vmatpush1.bf16.msra.mxu0 %v1585_v12  ;;  %664 = vmatpush1.bf16.msra.mxu1 %v1590_v13 }
 0x21b   :  { %624 = vmatprep.subr.bf16.mxu0 %v1597_v14  ;;  %665 = vmatprep.subr.bf16.mxu1 %v1604_v15 }
 0x21e   :  { %625 = vmatpush1.bf16.msra.mxu0 %v1609_v16  ;;  %666 = vmatpush1.bf16.msra.mxu1 %v1616_v17 }
 0x21f   :  { %626 = vmatprep.subr.bf16.mxu0 %v1621_v18  ;;  %667 = vmatprep.subr.bf16.mxu1 %v1628_v19 }
 0x222   :  { %627 = vmatpush1.bf16.msra.mxu0 %v1633_v20  ;;  %668 = vmatpush1.bf16.msra.mxu1 %v1638_v21 }
 0x223   :  { %628 = vmatprep.subr.bf16.mxu0 %v1645_v22  ;;  %669 = vmatprep.subr.bf16.mxu1 %v1652_v23 }
 0x226   :  { %629 = vmatpush1.bf16.msra.mxu0 %v1659_v24  ;;  %670 = vmatpush1.bf16.msra.mxu1 %v1664_v25 }
 0x227   :  { %630 = vmatprep.subr.bf16.mxu0 %v1671_v26  ;;  %671 = vmatprep.subr.bf16.mxu1 %v1676_v27 }
 0x22a   :  { %631 = vmatpush1.bf16.msra.mxu0 %v1683_v28  ;;  %672 = vmatpush1.bf16.msra.mxu1 %v1688_v29 }
 0x22b   :  { %632 = vmatprep.subr.bf16.mxu0 %v1695_v30  ;;  %673 = vmatprep.subr.bf16.mxu1 %v1700_v31 }
 0x22e   :  { %633 = vmatpush1.bf16.msra.mxu0 %v1707_v32  ;;  %674 = vmatpush1.bf16.msra.mxu1 %v1712_v33 }
 0x22f   :  { %753 = vmatprep.subr.bf16.mxu0 %v1527_v0  ;;  %794 = vmatprep.subr.bf16.mxu1 %v1534_v3 }
 0x2d1   :  { %v517_v42 = vpop.f32.mrf.mxu0  ;;  %v558_v58 = vpop.f32.mrf.mxu1 }
 0x2d3   :  { %v519_v59 = vpop.f32.mrf.mxu0  ;;  %v560_v60 = vpop.f32.mrf.mxu1 }
 0x2d4   :  { %v569_v61 = vcombine.low %v517_v42, %v519_v59  ;;  %v570_v62 = vcombine.low %v558_v58, %v560_v60 }
 0x2d5   :  { %v521_v63 = vpop.f32.mrf.mxu0  ;;  %v562_v2 = vpop.f32.mrf.mxu1 }
 0x2d6   :  { %v577_v34 = vrot.slane %v569_v61, %v1754_v43  ;;  %v584_v35 = vrot.slane %v570_v62, %v1754_v43 }
 0x2d7   :  { %v522_v37 = vpop.f32.mrf.mxu0  ;;  %v563_v38 = vpop.f32.mrf.mxu1 }
 0x2d8   :  { %v585_v39 = vcombine.low %v577_v34, %v584_v35 }
 0x2da   :  { %v587_v40 = vadd.f32 %v1331_v36, %v585_v39 }
 0x2dc   :  { %v588_v41 = vmul.f32 0.5, %v587_v40  ;;  %v593_v44 = vrot.slane %v587_v40, 2  ;;  %v599_v46 = vrot.slane %v587_v40, 4  ;;  %v602_v47 = vrot.slane %v587_v40, 6 }
 0x2de   :  { %1414 = vtanh.f32 %v588_v41  ;;  %v595_v45 = vmul.f32 0.5, %v593_v44  ;;  %v604_v48 = vmul.f32 0.5, %v602_v47 }
 0x2e0   :  { %1416 = vtanh.f32 %v595_v45  ;;  %v1333_v45 = vld [vmem:[%s2111_s0 + $0x18] sm:$0xff] }
 0x2e1   :  { %1418 = vtanh.f32 %v599_v46 }
 0x2e2   :  { %1420 = vtanh.f32 %v604_v48 }
 0x2eb   :  { %v1415_v49 = vpop.eup %1414 }
 0x2ec   :  { %v590_v50 = vmul.f32 0.5, %v1415_v49 }
 0x2ed   :  { %v1417_v52 = vpop.eup %1416 }
 0x2ee   :  { %v591_v53 = vadd.f32 0.5, %v590_v50  ;;  %v597_v54 = vmul.f32 0.5, %v1417_v52  ;;  %v1419_v56 = vpop.eup %1418 }
 0x2ef   :  { %v1421_v59 = vpop.eup %1420 }
 0x2f0   :  { %v598_v55 = vadd.f32 0.5, %v597_v54  ;;  %v609_v42 = vmul.f32 %v1419_v56, %v591_v53  ;;  %v606_v60 = vmul.f32 0.5, %v1421_v59 }
 0x2f2   :  { %v608_v57 = vmul.f32 %v598_v55, %v1807_v51  ;;  %v607_v61 = vadd.f32 0.5, %v606_v60 }
 0x2f4   :  { %v1853_v58 = vadd.f32 %v609_v42, %v608_v57 }
 0x2f6   :  { %1422 = vtanh.f32 %v1853_v58 }
 0x303   :  { %v1423_v62 = vpop.eup %1422 }
 0x304   :  { %v612_v63 = vmul.f32 %v1423_v62, %v607_v61 }
 0x306   :  { %v613_v2 = vpack.c.bf16 %v612_v63, %v612_v63 }
 0x308   :  { %1332 = vst [vmem:[%s2112_s2 + $0x2] sm:$0x1] %v613_v2  ;;  %651 = vmatmul.mubr.bf16.vlgmr.msra.gmra.mxu0 %v613_v2  ;;  %692 = vmatmul.mubr.bf16.vlgmr.msra.gmra.mxu1 %v613_v2 }
 0x309   :  { %754 = vmatpush1.bf16.msra.mxu0 %v1540_v4  ;;  %795 = vmatpush1.bf16.msra.mxu1 %v1545_v5 }
 0x30a   :  { %755 = vmatprep.subr.bf16.mxu0 %v1551_v6  ;;  %796 = vmatprep.subr.bf16.mxu1 %v1558_v7 }
 0x30b   :  { %785 = vmatprep.mubr.bf16.mxu0 %v1506_v1  ;;  %826 = vmatprep.mubr.bf16.mxu1 %v1506_v1 }
 0x30d   :  { %756 = vmatpush1.bf16.msra.mxu0 %v1563_v8  ;;  %797 = vmatpush1.bf16.msra.mxu1 %v1569_v9 }
 0x30e   :  { %757 = vmatprep.subr.bf16.mxu0 %v1575_v10  ;;  %798 = vmatprep.subr.bf16.mxu1 %v1580_v11 }
 0x311   :  { %758 = vmatpush1.bf16.msra.mxu0 %v1585_v12  ;;  %799 = vmatpush1.bf16.msra.mxu1 %v1590_v13 }
 0x312   :  { %759 = vmatprep.subr.bf16.mxu0 %v1597_v14  ;;  %800 = vmatprep.subr.bf16.mxu1 %v1604_v15 }
 0x315   :  { %760 = vmatpush1.bf16.msra.mxu0 %v1609_v16  ;;  %801 = vmatpush1.bf16.msra.mxu1 %v1616_v17 }
 0x316   :  { %761 = vmatprep.subr.bf16.mxu0 %v1621_v18  ;;  %802 = vmatprep.subr.bf16.mxu1 %v1628_v19 }
 0x319   :  { %762 = vmatpush1.bf16.msra.mxu0 %v1633_v20  ;;  %803 = vmatpush1.bf16.msra.mxu1 %v1638_v21 }
 0x31a   :  { %763 = vmatprep.subr.bf16.mxu0 %v1645_v22  ;;  %804 = vmatprep.subr.bf16.mxu1 %v1652_v23 }
 0x31d   :  { %764 = vmatpush1.bf16.msra.mxu0 %v1659_v24  ;;  %805 = vmatpush1.bf16.msra.mxu1 %v1664_v25 }
 0x31e   :  { %765 = vmatprep.subr.bf16.mxu0 %v1671_v26  ;;  %806 = vmatprep.subr.bf16.mxu1 %v1676_v27 }
 0x321   :  { %766 = vmatpush1.bf16.msra.mxu0 %v1683_v28  ;;  %807 = vmatpush1.bf16.msra.mxu1 %v1688_v29 }
 0x322   :  { %767 = vmatprep.subr.bf16.mxu0 %v1695_v30  ;;  %808 = vmatprep.subr.bf16.mxu1 %v1700_v31 }
 0x325   :  { %768 = vmatpush1.bf16.msra.mxu0 %v1707_v32  ;;  %809 = vmatpush1.bf16.msra.mxu1 %v1712_v33 }
 0x326   :  { %888 = vmatprep.subr.bf16.mxu0 %v1527_v0  ;;  %929 = vmatprep.subr.bf16.mxu1 %v1534_v3 }
 0x3c8   :  { %v652_v51 = vpop.f32.mrf.mxu0  ;;  %v693_v34 = vpop.f32.mrf.mxu1 }
 0x3ca   :  { %v654_v35 = vpop.f32.mrf.mxu0  ;;  %v695_v36 = vpop.f32.mrf.mxu1 }
 0x3cb   :  { %v704_v37 = vcombine.low %v652_v51, %v654_v35  ;;  %v705_v38 = vcombine.low %v693_v34, %v695_v36 }
 0x3cc   :  { %v656_v39 = vpop.f32.mrf.mxu0  ;;  %v697_v40 = vpop.f32.mrf.mxu1 }
 0x3cd   :  { %v712_v41 = vrot.slane %v704_v37, %v1754_v43  ;;  %v719_v44 = vrot.slane %v705_v38, %v1754_v43 }
 0x3ce   :  { %v657_v46 = vpop.f32.mrf.mxu0  ;;  %v698_v47 = vpop.f32.mrf.mxu1 }
 0x3cf   :  { %v720_v48 = vcombine.low %v712_v41, %v719_v44 }
 0x3d1   :  { %v722_v49 = vadd.f32 %v1333_v45, %v720_v48 }
 0x3d3   :  { %v723_v50 = vmul.f32 0.5, %v722_v49  ;;  %v728_v52 = vrot.slane %v722_v49, 2  ;;  %v734_v54 = vrot.slane %v722_v49, 4  ;;  %v737_v55 = vrot.slane %v722_v49, 6 }
 0x3d5   :  { %1424 = vtanh.f32 %v723_v50  ;;  %v730_v53 = vmul.f32 0.5, %v728_v52  ;;  %v739_v56 = vmul.f32 0.5, %v737_v55 }
 0x3d7   :  { %1426 = vtanh.f32 %v730_v53  ;;  %v1335_v53 = vld [vmem:[%s2111_s0 + $0x20] sm:$0xff] }
 0x3d8   :  { %1428 = vtanh.f32 %v734_v54 }
 0x3d9   :  { %1430 = vtanh.f32 %v739_v56 }
 0x3e2   :  { %v1425_v57 = vpop.eup %1424 }
 0x3e3   :  { %v725_v42 = vmul.f32 0.5, %v1425_v57 }
 0x3e4   :  { %v1427_v59 = vpop.eup %1426 }
 0x3e5   :  { %v726_v60 = vadd.f32 0.5, %v725_v42  ;;  %v732_v61 = vmul.f32 0.5, %v1427_v59  ;;  %v1429_v63 = vpop.eup %1428 }
 0x3e6   :  { %v1431_v35 = vpop.eup %1430 }
 0x3e7   :  { %v733_v62 = vadd.f32 0.5, %v732_v61  ;;  %v744_v51 = vmul.f32 %v1429_v63, %v726_v60  ;;  %v741_v36 = vmul.f32 0.5, %v1431_v35 }
 0x3e9   :  { %v743_v2 = vmul.f32 %v733_v62, %v1853_v58  ;;  %v742_v37 = vadd.f32 0.5, %v741_v36 }
 0x3eb   :  { %v1899_v34 = vadd.f32 %v744_v51, %v743_v2 }
 0x3ed   :  { %1432 = vtanh.f32 %v1899_v34 }
 0x3fa   :  { %v1433_v38 = vpop.eup %1432 }
 0x3fb   :  { %v747_v39 = vmul.f32 %v1433_v38, %v742_v37 }
 0x3fd   :  { %v748_v40 = vpack.c.bf16 %v747_v39, %v747_v39 }
 0x3ff   :  { %1334 = vst [vmem:[%s2112_s2 + $0x3] sm:$0x1] %v748_v40  ;;  %786 = vmatmul.mubr.bf16.vlgmr.msra.gmra.mxu0 %v748_v40  ;;  %827 = vmatmul.mubr.bf16.vlgmr.msra.gmra.mxu1 %v748_v40 }
 0x400   :  { %889 = vmatpush1.bf16.msra.mxu0 %v1540_v4  ;;  %930 = vmatpush1.bf16.msra.mxu1 %v1545_v5 }
 0x401   :  { %890 = vmatprep.subr.bf16.mxu0 %v1551_v6  ;;  %931 = vmatprep.subr.bf16.mxu1 %v1558_v7 }
 0x402   :  { %920 = vmatprep.mubr.bf16.mxu0 %v1506_v1  ;;  %961 = vmatprep.mubr.bf16.mxu1 %v1506_v1 }
 0x404   :  { %891 = vmatpush1.bf16.msra.mxu0 %v1563_v8  ;;  %932 = vmatpush1.bf16.msra.mxu1 %v1569_v9 }
 0x405   :  { %892 = vmatprep.subr.bf16.mxu0 %v1575_v10  ;;  %933 = vmatprep.subr.bf16.mxu1 %v1580_v11 }
 0x408   :  { %893 = vmatpush1.bf16.msra.mxu0 %v1585_v12  ;;  %934 = vmatpush1.bf16.msra.mxu1 %v1590_v13 }
 0x409   :  { %894 = vmatprep.subr.bf16.mxu0 %v1597_v14  ;;  %935 = vmatprep.subr.bf16.mxu1 %v1604_v15 }
 0x40c   :  { %895 = vmatpush1.bf16.msra.mxu0 %v1609_v16  ;;  %936 = vmatpush1.bf16.msra.mxu1 %v1616_v17 }
 0x40d   :  { %896 = vmatprep.subr.bf16.mxu0 %v1621_v18  ;;  %937 = vmatprep.subr.bf16.mxu1 %v1628_v19 }
 0x410   :  { %897 = vmatpush1.bf16.msra.mxu0 %v1633_v20  ;;  %938 = vmatpush1.bf16.msra.mxu1 %v1638_v21 }
 0x411   :  { %898 = vmatprep.subr.bf16.mxu0 %v1645_v22  ;;  %939 = vmatprep.subr.bf16.mxu1 %v1652_v23 }
 0x414   :  { %899 = vmatpush1.bf16.msra.mxu0 %v1659_v24  ;;  %940 = vmatpush1.bf16.msra.mxu1 %v1664_v25 }
 0x415   :  { %900 = vmatprep.subr.bf16.mxu0 %v1671_v26  ;;  %941 = vmatprep.subr.bf16.mxu1 %v1676_v27 }
 0x418   :  { %901 = vmatpush1.bf16.msra.mxu0 %v1683_v28  ;;  %942 = vmatpush1.bf16.msra.mxu1 %v1688_v29 }
 0x419   :  { %902 = vmatprep.subr.bf16.mxu0 %v1695_v30  ;;  %943 = vmatprep.subr.bf16.mxu1 %v1700_v31 }
 0x41c   :  { %903 = vmatpush1.bf16.msra.mxu0 %v1707_v32  ;;  %944 = vmatpush1.bf16.msra.mxu1 %v1712_v33 }
 0x41d   :  { %1023 = vmatprep.subr.bf16.mxu0 %v1527_v0  ;;  %1064 = vmatprep.subr.bf16.mxu1 %v1534_v3 }
 0x4bf   :  { %v787_v58 = vpop.f32.mrf.mxu0  ;;  %v828_v41 = vpop.f32.mrf.mxu1 }
 0x4c1   :  { %v789_v44 = vpop.f32.mrf.mxu0  ;;  %v830_v45 = vpop.f32.mrf.mxu1 }
 0x4c2   :  { %v839_v46 = vcombine.low %v787_v58, %v789_v44  ;;  %v840_v47 = vcombine.low %v828_v41, %v830_v45 }
 0x4c3   :  { %v791_v48 = vpop.f32.mrf.mxu0  ;;  %v832_v49 = vpop.f32.mrf.mxu1 }
 0x4c4   :  { %v847_v50 = vrot.slane %v839_v46, %v1754_v43  ;;  %v854_v52 = vrot.slane %v840_v47, %v1754_v43 }
 0x4c5   :  { %v792_v54 = vpop.f32.mrf.mxu0  ;;  %v833_v0 = vpop.f32.mrf.mxu1 }
 0x4c6   :  { %v855_v55 = vcombine.low %v847_v50, %v854_v52 }
 0x4c8   :  { %v857_v3 = vadd.f32 %v1335_v53, %v855_v55 }
 0x4ca   :  { %v858_v56 = vmul.f32 0.5, %v857_v3  ;;  %v863_v57 = vrot.slane %v857_v3, 2  ;;  %v869_v59 = vrot.slane %v857_v3, 4  ;;  %v872_v60 = vrot.slane %v857_v3, 6  ;;  %v1476_v3 = vld [vmem:[%s2110_s1 + $0xe0] ss:$16 sps:$4 sm:$0xff]  }
 0x4cc   :  { %1434 = vtanh.f32 %v858_v56  ;;  %v865_v42 = vmul.f32 0.5, %v863_v57  ;;  %v874_v61 = vmul.f32 0.5, %v872_v60  ;;  %v1477_v56 = vld [vmem:[%s2110_s1 + $0xe8] ss:$16 sps:$4 sm:$0xff]   ;;  %v1478_v57 = vld [vmem:[%s2110_s1 + $0xc4] ss:$16 sps:$4 sm:$0xff]  }
 0x4cd   :  { %v1481_v60 = vld [vmem:[%s2110_s1 + $0xc8] ss:$16 sps:$4 sm:$0xff]  }
 0x4ce   :  { %1436 = vtanh.f32 %v865_v42  ;;  %v1479_v42 = vld [vmem:[%s2110_s1 + $0xcc] ss:$16 sps:$4 sm:$0xff]  }
 0x4cf   :  { %1438 = vtanh.f32 %v869_v59  ;;  %v1480_v59 = vld [vmem:[%s2110_s1 + $0xc0] ss:$16 sps:$4 sm:$0xff]  }
 0x4d0   :  { %1440 = vtanh.f32 %v874_v61  ;;  %v1482_v61 = vld [vmem:[%s2110_s1 + $0xa4] ss:$16 sps:$4 sm:$0xff]  }
 0x4d9   :  { %v1435_v62 = vpop.eup %1434 }
 0x4da   :  { %v860_v63 = vmul.f32 0.5, %v1435_v62  ;;  %v1483_v62 = vld [vmem:[%s2110_s1 + $0xac] ss:$16 sps:$4 sm:$0xff]  }
 0x4db   :  { %v1437_v2 = vpop.eup %1436 }
 0x4dc   :  { %v861_v51 = vadd.f32 0.5, %v860_v63  ;;  %v867_v35 = vmul.f32 0.5, %v1437_v2  ;;  %v1439_v37 = vpop.eup %1438  ;;  %v1485_v63 = vld [vmem:[%s2110_s1 + $0xa8] ss:$16 sps:$4 sm:$0xff]   ;;  %v1486_v2 = vld [vmem:[%s2110_s1 + $0x84] ss:$16 sps:$4 sm:$0xff]  }
 0x4dd   :  { %v1441_v58 = vpop.eup %1440 }
 0x4de   :  { %v868_v36 = vadd.f32 0.5, %v867_v35  ;;  %v879_v39 = vmul.f32 %v1439_v37, %v861_v51  ;;  %v876_v41 = vmul.f32 0.5, %v1441_v58  ;;  %v1487_v51 = vld [vmem:[%s2110_s1 + $0x8c] ss:$16 sps:$4 sm:$0xff]   ;;  %v1488_v35 = vld [vmem:[%s2110_s1 + $0x80] ss:$16 sps:$4 sm:$0xff]  }
 0x4df   :  { %v1490_v37 = vld [vmem:[%s2110_s1 + $0x64] ss:$16 sps:$4 sm:$0xff]  }
 0x4e0   :  { %v878_v38 = vmul.f32 %v868_v36, %v1899_v34  ;;  %v877_v44 = vadd.f32 0.5, %v876_v41  ;;  %v1489_v36 = vld [vmem:[%s2110_s1 + $0x88] ss:$16 sps:$4 sm:$0xff]   ;;  %v1494_v58 = vld [vmem:[%s2110_s1 + $0x44] ss:$16 sps:$4 sm:$0xff]  }
 0x4e1   :  { %v1495_v41 = vld [vmem:[%s2110_s1 + $0x4c] ss:$16 sps:$4 sm:$0xff]  }
 0x4e2   :  { %v1945_v40 = vadd.f32 %v879_v39, %v878_v38  ;;  %v1491_v38 = vld [vmem:[%s2110_s1 + $0x6c] ss:$16 sps:$4 sm:$0xff]   ;;  %v1492_v39 = vld [vmem:[%s2110_s1 + $0x60] ss:$16 sps:$4 sm:$0xff]  }
 0x4e4   :  { %1442 = vtanh.f32 %v1945_v40 }
 0x4f1   :  { %v1443_v45 = vpop.eup %1442 }
 0x4f2   :  { %v882_v46 = vmul.f32 %v1443_v45, %v877_v44  ;;  %v1496_v44 = vld [vmem:[%s2110_s1 + $0x40] ss:$16 sps:$4 sm:$0xff]   ;;  %v1497_v45 = vld [vmem:[%s2110_s1 + $0x48] ss:$16 sps:$4 sm:$0xff]  }
 0x4f4   :  { %v883_v47 = vpack.c.bf16 %v882_v46, %v882_v46  ;;  %v1498_v46 = vld [vmem:[%s2110_s1 + $0x24] ss:$16 sps:$4 sm:$0xff]  }
 0x4f6   :  { %1336 = vst [vmem:[%s2112_s2 + $0x4] sm:$0x1] %v883_v47  ;;  %921 = vmatmul.mubr.bf16.vlgmr.msra.gmra.mxu0 %v883_v47  ;;  %962 = vmatmul.mubr.bf16.vlgmr.msra.gmra.mxu1 %v883_v47  ;;  %v1499_v47 = vld [vmem:[%s2110_s1 + $0x2c] ss:$16 sps:$4 sm:$0xff]  }
 0x4f7   :  { %1024 = vmatpush1.bf16.msra.mxu0 %v1540_v4  ;;  %1065 = vmatpush1.bf16.msra.mxu1 %v1545_v5  ;;  %v1474_v4 = vld [vmem:[%s2110_s1 + $0xe4] ss:$16 sps:$4 sm:$0xff]   ;;  %v1475_v5 = vld [vmem:[%s2110_s1 + $0xec] ss:$16 sps:$4 sm:$0xff]  }
 0x4f8   :  { %1025 = vmatprep.subr.bf16.mxu0 %v1551_v6  ;;  %1066 = vmatprep.subr.bf16.mxu1 %v1558_v7 }
 0x4f9   :  { %1055 = vmatprep.mubr.bf16.mxu0 %v1506_v1  ;;  %1096 = vmatprep.mubr.bf16.mxu1 %v1506_v1 }
 0x4fb   :  { %1026 = vmatpush1.bf16.msra.mxu0 %v1563_v8  ;;  %1067 = vmatpush1.bf16.msra.mxu1 %v1569_v9 }
 0x4fc   :  { %1027 = vmatprep.subr.bf16.mxu0 %v1575_v10  ;;  %1068 = vmatprep.subr.bf16.mxu1 %v1580_v11 }
 0x4ff   :  { %1028 = vmatpush1.bf16.msra.mxu0 %v1585_v12  ;;  %1069 = vmatpush1.bf16.msra.mxu1 %v1590_v13 }
 0x500   :  { %1029 = vmatprep.subr.bf16.mxu0 %v1597_v14  ;;  %1070 = vmatprep.subr.bf16.mxu1 %v1604_v15 }
 0x503   :  { %1030 = vmatpush1.bf16.msra.mxu0 %v1609_v16  ;;  %1071 = vmatpush1.bf16.msra.mxu1 %v1616_v17  ;;  %v1337_v16 = vld [vmem:[%s2111_s0 + $0x28] sm:$0xff] }
 0x504   :  { %1031 = vmatprep.subr.bf16.mxu0 %v1621_v18  ;;  %1072 = vmatprep.subr.bf16.mxu1 %v1628_v19 }
 0x507   :  { %1032 = vmatpush1.bf16.msra.mxu0 %v1633_v20  ;;  %1073 = vmatpush1.bf16.msra.mxu1 %v1638_v21 }
 0x508   :  { %1033 = vmatprep.subr.bf16.mxu0 %v1645_v22  ;;  %1074 = vmatprep.subr.bf16.mxu1 %v1652_v23 }
 0x50b   :  { %1034 = vmatpush1.bf16.msra.mxu0 %v1659_v24  ;;  %1075 = vmatpush1.bf16.msra.mxu1 %v1664_v25 }
 0x50c   :  { %1035 = vmatprep.subr.bf16.mxu0 %v1671_v26  ;;  %1076 = vmatprep.subr.bf16.mxu1 %v1676_v27 }
 0x50f   :  { %1036 = vmatpush1.bf16.msra.mxu0 %v1683_v28  ;;  %1077 = vmatpush1.bf16.msra.mxu1 %v1688_v29 }
 0x510   :  { %1037 = vmatprep.subr.bf16.mxu0 %v1695_v30  ;;  %1078 = vmatprep.subr.bf16.mxu1 %v1700_v31 }
 0x513   :  { %1038 = vmatpush1.bf16.msra.mxu0 %v1707_v32  ;;  %1079 = vmatpush1.bf16.msra.mxu1 %v1712_v33 }
 0x514   :  { %1158 = vmatprep.subr.bf16.mxu0 %v1474_v4  ;;  %1199 = vmatprep.subr.bf16.mxu1 %v1475_v5  ;;  %v1500_v4 = vld [vmem:[%s2110_s1 + $0x20] ss:$16 sps:$4 sm:$0xff]   ;;  %v1501_v5 = vld [vmem:[%s2110_s1 + $0x28] ss:$16 sps:$4 sm:$0xff]  }
 0x5b6   :  { %v922_v6 = vpop.f32.mrf.mxu0  ;;  %v963_v7 = vpop.f32.mrf.mxu1 }
 0x5b8   :  { %v924_v8 = vpop.f32.mrf.mxu0  ;;  %v965_v9 = vpop.f32.mrf.mxu1 }
 0x5b9   :  { %v974_v10 = vcombine.low %v922_v6, %v924_v8  ;;  %v975_v11 = vcombine.low %v963_v7, %v965_v9  ;;  %v1502_v6 = vld [vmem:[%s2110_s1 + $0x4] ss:$16 sps:$4 sm:$0xff]   ;;  %v1503_v7 = vld [vmem:[%s2110_s1 + $0xc] ss:$16 sps:$4 sm:$0xff]   ;;  %v1504_v8 = vld [vmem:[%s2110_s1] ss:$16 sps:$4 sm:$0xff]  }
 0x5ba   :  { %v926_v12 = vpop.f32.mrf.mxu0  ;;  %v967_v13 = vpop.f32.mrf.mxu1  ;;  %v1505_v9 = vld [vmem:[%s2110_s1 + $0x8] ss:$16 sps:$4 sm:$0xff]  }
 0x5bb   :  { %v982_v14 = vrot.slane %v974_v10, %v1754_v43  ;;  %v989_v15 = vrot.slane %v975_v11, %v1754_v43 }
 0x5bc   :  { %v927_v17 = vpop.f32.mrf.mxu0  ;;  %v968_v18 = vpop.f32.mrf.mxu1 }
 0x5bd   :  { %v990_v19 = vcombine.low %v982_v14, %v989_v15 }
 0x5bf   :  { %v992_v20 = vadd.f32 %v1337_v16, %v990_v19 }
 0x5c1   :  { %v993_v21 = vmul.f32 0.5, %v992_v20  ;;  %v998_v22 = vrot.slane %v992_v20, 2  ;;  %v1004_v24 = vrot.slane %v992_v20, 4  ;;  %v1007_v25 = vrot.slane %v992_v20, 6  ;;  %v1339_v20 = vld [vmem:[%s2111_s0 + $0x30] sm:$0xff] }
 0x5c3   :  { %1444 = vtanh.f32 %v993_v21  ;;  %v1000_v23 = vmul.f32 0.5, %v998_v22  ;;  %v1009_v26 = vmul.f32 0.5, %v1007_v25 }
 0x5c5   :  { %1446 = vtanh.f32 %v1000_v23 }
 0x5c6   :  { %1448 = vtanh.f32 %v1004_v24 }
 0x5c7   :  { %1450 = vtanh.f32 %v1009_v26 }
 0x5d0   :  { %v1445_v27 = vpop.eup %1444 }
 0x5d1   :  { %v995_v28 = vmul.f32 0.5, %v1445_v27 }
 0x5d2   :  { %v1447_v29 = vpop.eup %1446 }
 0x5d3   :  { %v996_v30 = vadd.f32 0.5, %v995_v28  ;;  %v1002_v31 = vmul.f32 0.5, %v1447_v29  ;;  %v1449_v33 = vpop.eup %1448 }
 0x5d4   :  { %v1451_v50 = vpop.eup %1450 }
 0x5d5   :  { %v1003_v32 = vadd.f32 0.5, %v1002_v31  ;;  %v1014_v48 = vmul.f32 %v1449_v33, %v996_v30  ;;  %v1011_v52 = vmul.f32 0.5, %v1451_v50 }
 0x5d7   :  { %v1013_v34 = vmul.f32 %v1003_v32, %v1945_v40  ;;  %v1012_v53 = vadd.f32 0.5, %v1011_v52  ;;  %v1493_v40 = vld [vmem:[%s2110_s1 + $0x68] ss:$16 sps:$4 sm:$0xff]  }
 0x5d9   :  { %v1995_v49 = vadd.f32 %v1014_v48, %v1013_v34 }
 0x5db   :  { %1452 = vtanh.f32 %v1995_v49 }
 0x5e8   :  { %v1453_v54 = vpop.eup %1452 }
 0x5e9   :  { %v1017_v0 = vmul.f32 %v1453_v54, %v1012_v53 }
 0x5eb   :  { %v1018_v55 = vpack.c.bf16 %v1017_v0, %v1017_v0 }
 0x5ed   :  { %1338 = vst [vmem:[%s2112_s2 + $0x5] sm:$0x1] %v1018_v55  ;;  %1056 = vmatmul.mubr.bf16.vlgmr.msra.gmra.mxu0 %v1018_v55  ;;  %1097 = vmatmul.mubr.bf16.vlgmr.msra.gmra.mxu1 %v1018_v55 }
 0x5ee   :  { %1159 = vmatpush1.bf16.msra.mxu0 %v1476_v3  ;;  %1200 = vmatpush1.bf16.msra.mxu1 %v1477_v56 }
 0x5ef   :  { %1160 = vmatprep.subr.bf16.mxu0 %v1478_v57  ;;  %1201 = vmatprep.subr.bf16.mxu1 %v1479_v42 }
 0x5f0   :  { %1190 = vmatprep.mubr.bf16.mxu0 %v1506_v1  ;;  %1231 = vmatprep.mubr.bf16.mxu1 %v1506_v1  ;;  %v1484_v1 = vld [vmem:[%s2110_s1 + $0xa0] ss:$16 sps:$4 sm:$0xff]  }
 0x5f2   :  { %1161 = vmatpush1.bf16.msra.mxu0 %v1480_v59  ;;  %1202 = vmatpush1.bf16.msra.mxu1 %v1481_v60 }
 0x5f3   :  { %1162 = vmatprep.subr.bf16.mxu0 %v1482_v61  ;;  %1203 = vmatprep.subr.bf16.mxu1 %v1483_v62 }
 0x5f6   :  { %1163 = vmatpush1.bf16.msra.mxu0 %v1484_v1  ;;  %1204 = vmatpush1.bf16.msra.mxu1 %v1485_v63 }
 0x5f7   :  { %1164 = vmatprep.subr.bf16.mxu0 %v1486_v2  ;;  %1205 = vmatprep.subr.bf16.mxu1 %v1487_v51 }
 0x5fa   :  { %1165 = vmatpush1.bf16.msra.mxu0 %v1488_v35  ;;  %1206 = vmatpush1.bf16.msra.mxu1 %v1489_v36 }
 0x5fb   :  { %1166 = vmatprep.subr.bf16.mxu0 %v1490_v37  ;;  %1207 = vmatprep.subr.bf16.mxu1 %v1491_v38  ;;  %v1341_v37 = vld [vmem:[%s2111_s0 + $0x38] sm:$0xff] }
 0x5fe   :  { %1167 = vmatpush1.bf16.msra.mxu0 %v1492_v39  ;;  %1208 = vmatpush1.bf16.msra.mxu1 %v1493_v40 }
 0x5ff   :  { %1168 = vmatprep.subr.bf16.mxu0 %v1494_v58  ;;  %1209 = vmatprep.subr.bf16.mxu1 %v1495_v41 }
 0x602   :  { %1169 = vmatpush1.bf16.msra.mxu0 %v1496_v44  ;;  %1210 = vmatpush1.bf16.msra.mxu1 %v1497_v45 }
 0x603   :  { %1170 = vmatprep.subr.bf16.mxu0 %v1498_v46  ;;  %1211 = vmatprep.subr.bf16.mxu1 %v1499_v47 }
 0x606   :  { %1171 = vmatpush1.bf16.msra.mxu0 %v1500_v4  ;;  %1212 = vmatpush1.bf16.msra.mxu1 %v1501_v5 }
 0x607   :  { %1172 = vmatprep.subr.bf16.mxu0 %v1502_v6  ;;  %1213 = vmatprep.subr.bf16.mxu1 %v1503_v7 }
 0x60a   :  { %1173 = vmatpush1.bf16.msra.mxu0 %v1504_v8  ;;  %1214 = vmatpush1.bf16.msra.mxu1 %v1505_v9 }
 0x6ad   :  { %v1057_v10 = vpop.f32.mrf.mxu0  ;;  %v1098_v11 = vpop.f32.mrf.mxu1 }
 0x6af   :  { %v1059_v12 = vpop.f32.mrf.mxu0  ;;  %v1100_v13 = vpop.f32.mrf.mxu1 }
 0x6b0   :  { %v1109_v14 = vcombine.low %v1057_v10, %v1059_v12  ;;  %v1110_v15 = vcombine.low %v1098_v11, %v1100_v13 }
 0x6b1   :  { %v1061_v16 = vpop.f32.mrf.mxu0  ;;  %v1102_v17 = vpop.f32.mrf.mxu1 }
 0x6b2   :  { %v1117_v18 = vrot.slane %v1109_v14, %v1754_v43  ;;  %v1124_v19 = vrot.slane %v1110_v15, %v1754_v43 }
 0x6b3   :  { %v1062_v21 = vpop.f32.mrf.mxu0  ;;  %v1103_v22 = vpop.f32.mrf.mxu1 }
 0x6b4   :  { %v1125_v23 = vcombine.low %v1117_v18, %v1124_v19 }
 0x6b6   :  { %v1127_v24 = vadd.f32 %v1339_v20, %v1125_v23 }
 0x6b8   :  { %v1128_v25 = vmul.f32 0.5, %v1127_v24  ;;  %v1133_v26 = vrot.slane %v1127_v24, 2  ;;  %v1139_v28 = vrot.slane %v1127_v24, 4  ;;  %v1142_v29 = vrot.slane %v1127_v24, 6 }
 0x6ba   :  { %1454 = vtanh.f32 %v1128_v25  ;;  %v1135_v27 = vmul.f32 0.5, %v1133_v26  ;;  %v1144_v30 = vmul.f32 0.5, %v1142_v29 }
 0x6bc   :  { %1456 = vtanh.f32 %v1135_v27 }
 0x6bd   :  { %1458 = vtanh.f32 %v1139_v28 }
 0x6be   :  { %1460 = vtanh.f32 %v1144_v30 }
 0x6c7   :  { %v1455_v31 = vpop.eup %1454 }
 0x6c8   :  { %v1130_v32 = vmul.f32 0.5, %v1455_v31 }
 0x6c9   :  { %v1457_v33 = vpop.eup %1456 }
 0x6ca   :  { %v1131_v34 = vadd.f32 0.5, %v1130_v32  ;;  %v1137_v48 = vmul.f32 0.5, %v1457_v33  ;;  %v1459_v52 = vpop.eup %1458 }
 0x6cb   :  { %v1461_v55 = vpop.eup %1460 }
 0x6cc   :  { %v1138_v50 = vadd.f32 0.5, %v1137_v48  ;;  %v1149_v54 = vmul.f32 %v1459_v52, %v1131_v34  ;;  %v1146_v3 = vmul.f32 0.5, %v1461_v55 }
 0x6ce   :  { %v1148_v53 = vmul.f32 %v1138_v50, %v1995_v49  ;;  %v1147_v56 = vadd.f32 0.5, %v1146_v3 }
 0x6d0   :  { %v1150_v0 = vadd.f32 %v1149_v54, %v1148_v53 }
 0x6d2   :  { %1462 = vtanh.f32 %v1150_v0 }
 0x6df   :  { %v1463_v57 = vpop.eup %1462 }
 0x6e0   :  { %v1152_v42 = vmul.f32 %v1463_v57, %v1147_v56 }
 0x6e2   :  { %v1153_v59 = vpack.c.bf16 %v1152_v42, %v1152_v42 }
 0x6e4   :  { %1340 = vst [vmem:[%s2112_s2 + $0x6] sm:$0x1] %v1153_v59  ;;  %1191 = vmatmul.mubr.bf16.vlgmr.msra.gmra.mxu0 %v1153_v59  ;;  %1232 = vmatmul.mubr.bf16.vlgmr.msra.gmra.mxu1 %v1153_v59 }
 0x7a4   :  { %v1192_v60 = vpop.f32.mrf.mxu0  ;;  %v1233_v61 = vpop.f32.mrf.mxu1 }
 0x7a6   :  { %v1194_v62 = vpop.f32.mrf.mxu0  ;;  %v1235_v1 = vpop.f32.mrf.mxu1 }
 0x7a7   :  { %v1244_v49 = vcombine.low %v1192_v60, %v1194_v62  ;;  %v1245_v63 = vcombine.low %v1233_v61, %v1235_v1 }
 0x7a8   :  { %v1196_v2 = vpop.f32.mrf.mxu0  ;;  %v1237_v51 = vpop.f32.mrf.mxu1 }
 0x7a9   :  { %v1252_v35 = vrot.slane %v1244_v49, %v1754_v43  ;;  %v1259_v36 = vrot.slane %v1245_v63, %v1754_v43 }
 0x7aa   :  { %v1197_v38 = vpop.f32.mrf.mxu0  ;;  %v1238_v39 = vpop.f32.mrf.mxu1 }
 0x7ab   :  { %v1260_v40 = vcombine.low %v1252_v35, %v1259_v36 }
 0x7ad   :  { %v1262_v58 = vadd.f32 %v1341_v37, %v1260_v40 }
 0x7af   :  { %v1263_v41 = vmul.f32 0.5, %v1262_v58  ;;  %v1268_v44 = vrot.slane %v1262_v58, 2  ;;  %v1274_v46 = vrot.slane %v1262_v58, 4  ;;  %v1277_v47 = vrot.slane %v1262_v58, 6 }
 0x7b1   :  { %1464 = vtanh.f32 %v1263_v41  ;;  %v1270_v45 = vmul.f32 0.5, %v1268_v44  ;;  %v1279_v4 = vmul.f32 0.5, %v1277_v47 }
 0x7b3   :  { %1466 = vtanh.f32 %v1270_v45 }
 0x7b4   :  { %1468 = vtanh.f32 %v1274_v46 }
 0x7b5   :  { %1470 = vtanh.f32 %v1279_v4 }
 0x7be   :  { %v1465_v5 = vpop.eup %1464 }
 0x7bf   :  { %v1265_v6 = vmul.f32 0.5, %v1465_v5 }
 0x7c0   :  { %v1467_v43 = vpop.eup %1466 }
 0x7c1   :  { %v1266_v7 = vadd.f32 0.5, %v1265_v6  ;;  %v1272_v8 = vmul.f32 0.5, %v1467_v43  ;;  %v1469_v10 = vpop.eup %1468 }
 0x7c2   :  { %v1471_v14 = vpop.eup %1470 }
 0x7c3   :  { %v1273_v9 = vadd.f32 0.5, %v1272_v8  ;;  %v1284_v12 = vmul.f32 %v1469_v10, %v1266_v7  ;;  %v1281_v15 = vmul.f32 0.5, %v1471_v14 }
 0x7c5   :  { %v1283_v11 = vmul.f32 %v1273_v9, %v1150_v0  ;;  %v1282_v16 = vadd.f32 0.5, %v1281_v15 }
 0x7c7   :  { %v1285_v13 = vadd.f32 %v1284_v12, %v1283_v11 }
 0x7c9   :  { %1472 = vtanh.f32 %v1285_v13  ;;  %1292 = vst [vmem:[#allocation3] sm:$0x3] %v1285_v13 }
 0x7d6   :  { %v1473_v17 = vpop.eup %1472 }
 0x7d7   :  { %v1287_v18 = vmul.f32 %v1473_v17, %v1282_v16 }
 0x7d9   :  { %v1288_v19 = vpack.c.bf16 %v1287_v18, %v1287_v18  ;;  %1291 = vst [vmem:[#allocation2] sm:$0x3] %v1287_v18 }
 0x7db   :  { %1342 = vst [vmem:[%s2112_s2 + $0x7] sm:$0x1] %v1288_v19 }

</bundles_post_ra>
